<compile_context>
chip_gen: v7x
topology: tpu7x:2x2x1
jax: 0.10.0
libtpu: 0.0.40
codegen_flags: <defaults>
</compile_context>

<pallas_src>
import math
from functools import lru_cache

import jax
import jax.numpy as jnp
from jax import lax
from jax.experimental import pallas as pl
from jax.experimental.pallas import tpu as pltpu

_TM = 256          # row tile for the flattened 1x1-conv matmuls
_BN_EPS = 1e-5


# ----------------------------------------------------------------------------
# Pallas kernels (builders cached per shape signature)
# ----------------------------------------------------------------------------
@lru_cache(maxsize=None)
def _conv1x1_in_fn(Mp, Cin, Ch, tm):
    """relu(bn1(x)) @ W1 + b1, then relu(bn2(.)) — prologue/epilogue fused."""

    def kernel(x_ref, s1_ref, t1_ref, w_ref, b_ref, s2_ref, t2_ref, o_ref):
        # bn1 + relu prologue in f32
        a = jnp.maximum(x_ref[...].astype(jnp.float32) * s1_ref[...] + t1_ref[...], 0.0)
        # 1x1 conv == matmul on the MXU (bf16 operands, f32 accumulation)
        acc = jnp.dot(a.astype(jnp.bfloat16), w_ref[...],
                      preferred_element_type=jnp.float32)
        acc = acc + b_ref[...]
        # bn2 + relu epilogue in f32
        y = jnp.maximum(acc * s2_ref[...] + t2_ref[...], 0.0)
        o_ref[...] = y.astype(o_ref.dtype)

    return pl.pallas_call(
        kernel,
        out_shape=jax.ShapeDtypeStruct((Mp, Ch), jnp.bfloat16),
        grid=(Mp // tm,),
        in_specs=[pl.BlockSpec((tm, Cin), lambda i: (i, 0)),
                  pl.BlockSpec((1, Cin), lambda i: (0, 0)),
                  pl.BlockSpec((1, Cin), lambda i: (0, 0)),
                  pl.BlockSpec((Cin, Ch), lambda i: (0, 0)),
                  pl.BlockSpec((1, Ch), lambda i: (0, 0)),
                  pl.BlockSpec((1, Ch), lambda i: (0, 0)),
                  pl.BlockSpec((1, Ch), lambda i: (0, 0))],
        out_specs=pl.BlockSpec((tm, Ch), lambda i: (i, 0)),
        compiler_params=pltpu.CompilerParams(dimension_semantics=("parallel",)),
    )


@lru_cache(maxsize=None)
def _conv3x3_fn(B, nH, th, W, C, Co):
    """3x3 conv (spatial pad already applied) + bias + fused relu(bn3) epilogue.

    Input row windows: (B, nH, th+2, W+2, C) bf16; output (B, nH*th, W, Co) bf16.
    No im2col materialization — nine shifted dots inside the kernel.
    """

    def kernel(x_ref, w_ref, b_ref, s_ref, t_ref, o_ref):
        x = x_ref[0, 0]                                    # (th+2, W+2, C)
        acc = jnp.zeros((th * W, Co), jnp.float32)
        for di in range(3):
            for dj in range(3):
                patch = x[di:di + th, dj:dj + W, :].reshape(th * W, C)
                acc = acc + jnp.dot(patch, w_ref[di, dj],
                                    preferred_element_type=jnp.float32)
        y = acc + b_ref[...]
        y = jnp.maximum(y * s_ref[...] + t_ref[...], 0.0)   # bn3 + relu epilogue
        o_ref[0] = y.reshape(th, W, Co).astype(o_ref.dtype)

    return pl.pallas_call(
        kernel,
        out_shape=jax.ShapeDtypeStruct((B, nH * th, W, Co), jnp.bfloat16),
        grid=(B, nH),
        in_specs=[pl.BlockSpec((1, 1, th + 2, W + 2, C),
                               lambda b, i: (b, i, 0, 0, 0)),
                  pl.BlockSpec((3, 3, C, Co), lambda b, i: (0, 0, 0, 0)),
                  pl.BlockSpec((1, Co), lambda b, i: (0, 0)),
                  pl.BlockSpec((1, Co), lambda b, i: (0, 0)),
                  pl.BlockSpec((1, Co), lambda b, i: (0, 0))],
        out_specs=pl.BlockSpec((1, th, W, Co), lambda b, i: (b, i, 0, 0)),
        compiler_params=pltpu.CompilerParams(
            dimension_semantics=("parallel", "parallel")),
    )


@lru_cache(maxsize=None)
def _conv1x1_out_skip_fn(Mp, Ch, Cin, Co, tm):
    """h @ W3 + b3 + (x @ Wskip + bskip): conv3, skip conv and residual add fused."""

    def kernel(h_ref, w3_ref, b3_ref, x_ref, ws_ref, bs_ref, o_ref):
        main = jnp.dot(h_ref[...], w3_ref[...], preferred_element_type=jnp.float32)
        res = jnp.dot(x_ref[...], ws_ref[...], preferred_element_type=jnp.float32)
        o_ref[...] = main + b3_ref[...] + res + bs_ref[...]

    return pl.pallas_call(
        kernel,
        out_shape=jax.ShapeDtypeStruct((Mp, Co), jnp.float32),
        grid=(Mp // tm,),
        in_specs=[pl.BlockSpec((tm, Ch), lambda i: (i, 0)),
                  pl.BlockSpec((Ch, Co), lambda i: (0, 0)),
                  pl.BlockSpec((1, Co), lambda i: (0, 0)),
                  pl.BlockSpec((tm, Cin), lambda i: (i, 0)),
                  pl.BlockSpec((Cin, Co), lambda i: (0, 0)),
                  pl.BlockSpec((1, Co), lambda i: (0, 0))],
        out_specs=pl.BlockSpec((tm, Co), lambda i: (i, 0)),
        compiler_params=pltpu.CompilerParams(dimension_semantics=("parallel",)),
    )


@lru_cache(maxsize=None)
def _conv1x1_out_id_fn(Mp, Ch, Co, tm):
    """h @ W3 + b3 + x: conv3 and identity residual add fused (inp_dim == out_dim)."""

    def kernel(h_ref, w3_ref, b3_ref, x_ref, o_ref):
        main = jnp.dot(h_ref[...], w3_ref[...], preferred_element_type=jnp.float32)
        o_ref[...] = main + b3_ref[...] + x_ref[...].astype(jnp.float32)

    return pl.pallas_call(
        kernel,
        out_shape=jax.ShapeDtypeStruct((Mp, Co), jnp.float32),
        grid=(Mp // tm,),
        in_specs=[pl.BlockSpec((tm, Ch), lambda i: (i, 0)),
                  pl.BlockSpec((Ch, Co), lambda i: (0, 0)),
                  pl.BlockSpec((1, Co), lambda i: (0, 0)),
                  pl.BlockSpec((tm, Co), lambda i: (i, 0))],
        out_specs=pl.BlockSpec((tm, Co), lambda i: (i, 0)),
        compiler_params=pltpu.CompilerParams(dimension_semantics=("parallel",)),
    )


# ----------------------------------------------------------------------------
# Parameter init (deterministic) and BN folding
# ----------------------------------------------------------------------------
def _conv_init(key, cin, cout, k):
    k1, k2 = jax.random.split(key)
    fan_in = cin * k * k
    std = math.sqrt(2.0 / fan_in)
    w = std * jax.random.normal(k1, (k, k, cin, cout), jnp.float32)   # HWIO
    bound = 1.0 / math.sqrt(fan_in)
    b = jax.random.uniform(k2, (cout,), jnp.float32, -bound, bound)
    return w, b


def _bn_init(key, c):
    k1, k2, k3, k4 = jax.random.split(key, 4)
    return {'gamma': jax.random.uniform(k1, (c,), jnp.float32, 0.5, 1.5),
            'beta': 0.1 * jax.random.normal(k2, (c,), jnp.float32),
            'mean': 0.1 * jax.random.normal(k3, (c,), jnp.float32),
            'var': jax.random.uniform(k4, (c,), jnp.float32, 0.5, 1.5)}


def _bn_fold(bn, eps=_BN_EPS):
    s = bn['gamma'] / jnp.sqrt(bn['var'] + eps)
    t = bn['beta'] - bn['mean'] * s
    return s.reshape(1, -1), t.reshape(1, -1)


def init_residual(key, inp_dim, out_dim):
    half = out_dim // 2
    ks = jax.random.split(key, 7)
    w1, b1 = _conv_init(ks[0], inp_dim, half, 1)
    w2, b2 = _conv_init(ks[1], half, half, 3)
    w3, b3 = _conv_init(ks[2], half, out_dim, 1)
    ws, bs = _conv_init(ks[3], inp_dim, out_dim, 1)
    bn1 = _bn_init(ks[4], inp_dim)
    bn2 = _bn_init(ks[5], half)
    bn3 = _bn_init(ks[6], half)

    s1, t1 = _bn_fold(bn1)
    s2, t2 = _bn_fold(bn2)
    s3, t3 = _bn_fold(bn3)

    params = {
        'w1m': w1.reshape(inp_dim, half).astype(jnp.bfloat16), 'b1': b1.reshape(1, -1),
        'w2m': w2.astype(jnp.bfloat16), 'b2': b2.reshape(1, -1),
        'w3m': w3.reshape(half, out_dim).astype(jnp.bfloat16), 'b3': b3.reshape(1, -1),
        's1': s1, 't1': t1, 's2': s2, 't2': t2, 's3': s3, 't3': t3,
    }
    if inp_dim != out_dim:                      # need_skip
        params['wsm'] = ws.reshape(inp_dim, out_dim).astype(jnp.bfloat16)
        params['bs'] = bs.reshape(1, -1)

    masters = {'w1': w1, 'b1': b1, 'w2': w2, 'b2': b2, 'w3': w3, 'b3': b3,
               'ws': ws, 'bs': bs, 'bn1': bn1, 'bn2': bn2, 'bn3': bn3,
               'need_skip': inp_dim != out_dim}
    return params, masters


# ----------------------------------------------------------------------------
# Forward pass
# ----------------------------------------------------------------------------
def _pick_row_tile(H):
    if H >= 32:
        return 32
    if H >= 8:
        return 8
    return H


@jax.jit
def residual_forward(params, x_nchw):
    """Residual forward; input/output are NCHW f32 (matching PyTorch)."""
    x = jnp.transpose(x_nchw, (0, 2, 3, 1)).astype(jnp.float32)     # NHWC
    B, H, W, Cin = x.shape
    Ch = params['w1m'].shape[1]         # out_dim // 2
    Co = params['w3m'].shape[1]         # out_dim

    # ---- conv1 (1x1) with fused bn1+relu prologue, bn2+relu epilogue -------
    M = B * H * W
    tm = _TM
    Mp = pl.cdiv(M, tm) * tm
    x_flat = x.reshape(M, Cin).astype(jnp.bfloat16)
    x_flat = jnp.pad(x_flat, ((0, Mp - M), (0, 0)))
    h1 = _conv1x1_in_fn(Mp, Cin, Ch, tm)(
        x_flat, params['s1'], params['t1'], params['w1m'], params['b1'],
        params['s2'], params['t2'])
    h1 = h1[:M].reshape(B, H, W, Ch)

    # ---- conv2 (3x3, pad=1) with fused bn3+relu epilogue --------------------
    th = _pick_row_tile(H)
    nH = pl.cdiv(H, th)
    Hp = nH * th
    # zero-pad AFTER bn2+relu (exactly where Conv2d's zero padding sits)
    h1p = jnp.pad(h1, ((0, 0), (1, 1 + Hp - H), (1, 1), (0, 0)))   # (B, Hp+2, W+2, Ch)
    # overlapping row windows (2-row halo per tile) — cheap compared to im2col
    wins = jnp.stack([h1p[:, i * th:i * th + th + 2] for i in range(nH)], axis=1)
    h2 = _conv3x3_fn(B, nH, th, W, Ch, Ch)(
        wins, params['w2m'], params['b2'], params['s3'], params['t3'])
    h2 = h2[:, :H]                                                  # (B, H, W, Ch)

    # ---- conv3 (1x1) + skip conv / identity + residual add (one kernel) ----
    h2_flat = jnp.pad(h2.reshape(M, Ch), ((0, Mp - M), (0, 0)))
    if 'wsm' in params:
        out = _conv1x1_out_skip_fn(Mp, Ch, Cin, Co, tm)(
            h2_flat, params['w3m'], params['b3'], x_flat,
            params['wsm'], params['bs'])
    else:
        out = _conv1x1_out_id_fn(Mp, Ch, Co, tm)(
            h2_flat, params['w3m'], params['b3'], x_flat)
    out = out[:M].reshape(B, H, W, Co)
    return jnp.transpose(out, (0, 3, 1, 2))                         # NCHW


# ----------------------------------------------------------------------------
# Pure-JAX f32 reference (for verification only)
# ----------------------------------------------------------------------------
def ref_forward(m, x_nchw):
    x = jnp.transpose(x_nchw, (0, 2, 3, 1)).astype(jnp.float32)

    def conv(h, w, b, pad):
        y = lax.conv_general_dilated(h, w, (1, 1), [(pad, pad), (pad, pad)],
                                     dimension_numbers=('NHWC', 'HWIO', 'NHWC'))
        return y + b.reshape(1, 1, 1, -1)

    def bnrelu(h, bn):
        s = bn['gamma'] / jnp.sqrt(bn['var'] + _BN_EPS)
        t = bn['beta'] - bn['mean'] * s
        return jnp.maximum(h * s + t, 0.0)

    res = conv(x, m['ws'], m['bs'], 0) if m['need_skip'] else x
    out = bnrelu(x, m['bn1'])
    out = conv(out, m['w1'], m['b1'], 0)
    out = bnrelu(out, m['bn2'])
    out = conv(out, m['w2'], m['b2'], 1)
    out = bnrelu(out, m['bn3'])
    out = conv(out, m['w3'], m['b3'], 0)
    return jnp.transpose(out + res, (0, 3, 1, 2))


# ----------------------------------------------------------------------------
if __name__ == "__main__":
    B, Cin, Cout, H, W = 2, 32, 64, 16, 16
    root = jax.random.PRNGKey(0)
    k_p1, k_p2, k_x = jax.random.split(root, 3)

    x = jax.random.normal(k_x, (B, Cin, H, W), jnp.float32)

    # case 1: inp_dim != out_dim -> skip-conv residual path
    params, masters = init_residual(k_p1, Cin, Cout)
    out = residual_forward(params, x)
    jax.block_until_ready(out)
    assert out.shape == (B, Cout, H, W), out.shape
    ref = ref_forward(masters, x)
    err = float(jnp.max(jnp.abs(out - ref)) / (jnp.max(jnp.abs(ref)) + 1e-6))
    assert err < 5e-2, f"skip-path mismatch: rel-to-max err {err}"

    # case 2: inp_dim == out_dim -> identity residual path
    params2, masters2 = init_residual(k_p2, Cin, Cin)
    out2 = residual_forward(params2, x)
    jax.block_until_ready(out2)
    assert out2.shape == (B, Cin, H, W), out2.shape
    ref2 = ref_forward(masters2, x)
    err2 = float(jnp.max(jnp.abs(out2 - ref2)) / (jnp.max(jnp.abs(ref2)) + 1e-6))
    assert err2 < 5e-2, f"identity-path mismatch: rel-to-max err {err2}"

    print("KERNEL_OK")
</pallas_src>

<mosaic_0001>
module attributes {stable_mosaic.version = 11 : i64} {
  func.func @kernel(%arg0: i32, %arg1: memref<256x32xbf16, #tpu.memory_space<vmem>>, %arg2: memref<1x32xf32, #tpu.memory_space<vmem>>, %arg3: memref<1x32xf32, #tpu.memory_space<vmem>>, %arg4: memref<32x32xbf16, #tpu.memory_space<vmem>>, %arg5: memref<1x32xf32, #tpu.memory_space<vmem>>, %arg6: memref<1x32xf32, #tpu.memory_space<vmem>>, %arg7: memref<1x32xf32, #tpu.memory_space<vmem>>, %arg8: memref<256x32xbf16, #tpu.memory_space<vmem>>) attributes {dimension_semantics = [#tpu.dimension_semantics<parallel>], iteration_bounds = array<i64: 2>, scalar_prefetch = 0 : i64, scratch_operands = 0 : i64, tpu.core_type = #tpu.core_type<tc>, window_params = [{transform_indices = @transform_0, window_bounds = array<i64: 256, 32>}, {pipeline_mode = #tpu.pipeline_mode<synchronous>, transform_indices = @transform_1, window_bounds = array<i64: 1, 32>}, {pipeline_mode = #tpu.pipeline_mode<synchronous>, transform_indices = @transform_2, window_bounds = array<i64: 1, 32>}, {pipeline_mode = #tpu.pipeline_mode<synchronous>, transform_indices = @transform_3, window_bounds = array<i64: 32, 32>}, {pipeline_mode = #tpu.pipeline_mode<synchronous>, transform_indices = @transform_4, window_bounds = array<i64: 1, 32>}, {pipeline_mode = #tpu.pipeline_mode<synchronous>, transform_indices = @transform_5, window_bounds = array<i64: 1, 32>}, {pipeline_mode = #tpu.pipeline_mode<synchronous>, transform_indices = @transform_6, window_bounds = array<i64: 1, 32>}, {transform_indices = @transform_7, window_bounds = array<i64: 256, 32>}]} {
    %c0 = arith.constant 0 : index
    %c0_0 = arith.constant 0 : index
    %0 = vector.load %arg1[%c0, %c0_0] : memref<256x32xbf16, #tpu.memory_space<vmem>>, vector<256x32xbf16>
    %1 = arith.extf %0 : vector<256x32xbf16> to vector<256x32xf32>
    %c0_1 = arith.constant 0 : index
    %c0_2 = arith.constant 0 : index
    %2 = vector.load %arg2[%c0_1, %c0_2] : memref<1x32xf32, #tpu.memory_space<vmem>>, vector<1x32xf32>
    %3 = vector.broadcast %2 : vector<1x32xf32> to vector<256x32xf32>
    %4 = arith.mulf %1, %3 : vector<256x32xf32>
    %c0_3 = arith.constant 0 : index
    %c0_4 = arith.constant 0 : index
    %5 = vector.load %arg3[%c0_3, %c0_4] : memref<1x32xf32, #tpu.memory_space<vmem>>, vector<1x32xf32>
    %6 = vector.broadcast %5 : vector<1x32xf32> to vector<256x32xf32>
    %7 = arith.addf %4, %6 : vector<256x32xf32>
    %cst = arith.constant 0.000000e+00 : f32
    %8 = vector.broadcast %cst : f32 to vector<256x32xf32>
    %9 = arith.maximumf %7, %8 : vector<256x32xf32>
    %10 = arith.truncf %9 : vector<256x32xf32> to vector<256x32xbf16>
    %c0_5 = arith.constant 0 : index
    %c0_6 = arith.constant 0 : index
    %11 = vector.load %arg4[%c0_5, %c0_6] : memref<32x32xbf16, #tpu.memory_space<vmem>>, vector<32x32xbf16>
    %cst_7 = arith.constant dense<0.000000e+00> : vector<256x32xf32>
    %12 = tpu.matmul %10, %11, %cst_7 {dimension_numbers = #tpu.dot_dimension_numbers<[1], [0], [0], [1], [0, 0, 1, 1], [], []>} : vector<256x32xbf16>, vector<32x32xbf16>, vector<256x32xf32> -> vector<256x32xf32>
    %c0_8 = arith.constant 0 : index
    %c0_9 = arith.constant 0 : index
    %13 = vector.load %arg5[%c0_8, %c0_9] : memref<1x32xf32, #tpu.memory_space<vmem>>, vector<1x32xf32>
    %14 = vector.broadcast %13 : vector<1x32xf32> to vector<256x32xf32>
    %15 = arith.addf %12, %14 : vector<256x32xf32>
    %c0_10 = arith.constant 0 : index
    %c0_11 = arith.constant 0 : index
    %16 = vector.load %arg6[%c0_10, %c0_11] : memref<1x32xf32, #tpu.memory_space<vmem>>, vector<1x32xf32>
    %17 = vector.broadcast %16 : vector<1x32xf32> to vector<256x32xf32>
    %18 = arith.mulf %15, %17 : vector<256x32xf32>
    %c0_12 = arith.constant 0 : index
    %c0_13 = arith.constant 0 : index
    %19 = vector.load %arg7[%c0_12, %c0_13] : memref<1x32xf32, #tpu.memory_space<vmem>>, vector<1x32xf32>
    %20 = vector.broadcast %19 : vector<1x32xf32> to vector<256x32xf32>
    %21 = arith.addf %18, %20 : vector<256x32xf32>
    %cst_14 = arith.constant 0.000000e+00 : f32
    %22 = vector.broadcast %cst_14 : f32 to vector<256x32xf32>
    %23 = arith.maximumf %21, %22 : vector<256x32xf32>
    %24 = arith.truncf %23 : vector<256x32xf32> to vector<256x32xbf16>
    %c0_15 = arith.constant 0 : index
    %c0_16 = arith.constant 0 : index
    %25 = vector.load %arg8[%c0_15, %c0_16] : memref<256x32xbf16, #tpu.memory_space<vmem>>, vector<256x32xbf16>
    tpu.vector_store %arg8[%c0_15, %c0_16], %24 {strides = array<i32>} : memref<256x32xbf16, #tpu.memory_space<vmem>>, vector<256x32xbf16>,
    return
  }
  func.func @transform_0(%arg0: i32) -> (i32, i32) {
    %c0_i32 = arith.constant 0 : i32
    %c0_i32_0 = arith.constant 0 : i32
    return %arg0, %c0_i32 : i32, i32
  }
  func.func @transform_1(%arg0: i32) -> (i32, i32) {
    %c0_i32 = arith.constant 0 : i32
    %c0_i32_0 = arith.constant 0 : i32
    %c0_i32_1 = arith.constant 0 : i32
    return %c0_i32, %c0_i32_0 : i32, i32
  }
  func.func @transform_2(%arg0: i32) -> (i32, i32) {
    %c0_i32 = arith.constant 0 : i32
    %c0_i32_0 = arith.constant 0 : i32
    %c0_i32_1 = arith.constant 0 : i32
    return %c0_i32, %c0_i32_0 : i32, i32
  }
  func.func @transform_3(%arg0: i32) -> (i32, i32) {
    %c0_i32 = arith.constant 0 : i32
    %c0_i32_0 = arith.constant 0 : i32
    %c0_i32_1 = arith.constant 0 : i32
    return %c0_i32, %c0_i32_0 : i32, i32
  }
  func.func @transform_4(%arg0: i32) -> (i32, i32) {
    %c0_i32 = arith.constant 0 : i32
    %c0_i32_0 = arith.constant 0 : i32
    %c0_i32_1 = arith.constant 0 : i32
    return %c0_i32, %c0_i32_0 : i32, i32
  }
  func.func @transform_5(%arg0: i32) -> (i32, i32) {
    %c0_i32 = arith.constant 0 : i32
    %c0_i32_0 = arith.constant 0 : i32
    %c0_i32_1 = arith.constant 0 : i32
    return %c0_i32, %c0_i32_0 : i32, i32
  }
  func.func @transform_6(%arg0: i32) -> (i32, i32) {
    %c0_i32 = arith.constant 0 : i32
    %c0_i32_0 = arith.constant 0 : i32
    %c0_i32_1 = arith.constant 0 : i32
    return %c0_i32, %c0_i32_0 : i32, i32
  }
  func.func @transform_7(%arg0: i32) -> (i32, i32) {
    %c0_i32 = arith.constant 0 : i32
    %c0_i32_0 = arith.constant 0 : i32
    return %arg0, %c0_i32 : i32, i32
  }
}

module attributes {stable_mosaic.version = 11 : i64} {
  func.func @kernel(%arg0: i32, %arg1: memref<256x32xbf16, #tpu.memory_space<vmem>>, %arg2: memref<32x64xbf16, #tpu.memory_space<vmem>>, %arg3: memref<1x64xf32, #tpu.memory_space<vmem>>, %arg4: memref<256x32xbf16, #tpu.memory_space<vmem>>, %arg5: memref<32x64xbf16, #tpu.memory_space<vmem>>, %arg6: memref<1x64xf32, #tpu.memory_space<vmem>>, %arg7: memref<256x64xf32, #tpu.memory_space<vmem>>) attributes {dimension_semantics = [#tpu.dimension_semantics<parallel>], iteration_bounds = array<i64: 2>, scalar_prefetch = 0 : i64, scratch_operands = 0 : i64, tpu.core_type = #tpu.core_type<tc>, window_params = [{transform_indices = @transform_0, window_bounds = array<i64: 256, 32>}, {pipeline_mode = #tpu.pipeline_mode<synchronous>, transform_indices = @transform_1, window_bounds = array<i64: 32, 64>}, {pipeline_mode = #tpu.pipeline_mode<synchronous>, transform_indices = @transform_2, window_bounds = array<i64: 1, 64>}, {transform_indices = @transform_3, window_bounds = array<i64: 256, 32>}, {pipeline_mode = #tpu.pipeline_mode<synchronous>, transform_indices = @transform_4, window_bounds = array<i64: 32, 64>}, {pipeline_mode = #tpu.pipeline_mode<synchronous>, transform_indices = @transform_5, window_bounds = array<i64: 1, 64>}, {transform_indices = @transform_6, window_bounds = array<i64: 256, 64>}]} {
    %c0 = arith.constant 0 : index
    %c0_0 = arith.constant 0 : index
    %0 = vector.load %arg1[%c0, %c0_0] : memref<256x32xbf16, #tpu.memory_space<vmem>>, vector<256x32xbf16>
    %c0_1 = arith.constant 0 : index
    %c0_2 = arith.constant 0 : index
    %1 = vector.load %arg2[%c0_1, %c0_2] : memref<32x64xbf16, #tpu.memory_space<vmem>>, vector<32x64xbf16>
    %cst = arith.constant dense<0.000000e+00> : vector<256x64xf32>
    %2 = tpu.matmul %0, %1, %cst {dimension_numbers = #tpu.dot_dimension_numbers<[1], [0], [0], [1], [0, 0, 1, 1], [], []>} : vector<256x32xbf16>, vector<32x64xbf16>, vector<256x64xf32> -> vector<256x64xf32>
    %c0_3 = arith.constant 0 : index
    %c0_4 = arith.constant 0 : index
    %3 = vector.load %arg4[%c0_3, %c0_4] : memref<256x32xbf16, #tpu.memory_space<vmem>>, vector<256x32xbf16>
    %c0_5 = arith.constant 0 : index
    %c0_6 = arith.constant 0 : index
    %4 = vector.load %arg5[%c0_5, %c0_6] : memref<32x64xbf16, #tpu.memory_space<vmem>>, vector<32x64xbf16>
    %cst_7 = arith.constant dense<0.000000e+00> : vector<256x64xf32>
    %5 = tpu.matmul %3, %4, %cst_7 {dimension_numbers = #tpu.dot_dimension_numbers<[1], [0], [0], [1], [0, 0, 1, 1], [], []>} : vector<256x32xbf16>, vector<32x64xbf16>, vector<256x64xf32> -> vector<256x64xf32>
    %c0_8 = arith.constant 0 : index
    %c0_9 = arith.constant 0 : index
    %6 = vector.load %arg3[%c0_8, %c0_9] : memref<1x64xf32, #tpu.memory_space<vmem>>, vector<1x64xf32>
    %7 = vector.broadcast %6 : vector<1x64xf32> to vector<256x64xf32>
    %8 = arith.addf %2, %7 : vector<256x64xf32>
    %9 = arith.addf %8, %5 : vector<256x64xf32>
    %c0_10 = arith.constant 0 : index
    %c0_11 = arith.constant 0 : index
    %10 = vector.load %arg6[%c0_10, %c0_11] : memref<1x64xf32, #tpu.memory_space<vmem>>, vector<1x64xf32>
    %11 = vector.broadcast %10 : vector<1x64xf32> to vector<256x64xf32>
    %12 = arith.addf %9, %11 : vector<256x64xf32>
    %c0_12 = arith.constant 0 : index
    %c0_13 = arith.constant 0 : index
    %13 = vector.load %arg7[%c0_12, %c0_13] : memref<256x64xf32, #tpu.memory_space<vmem>>, vector<256x64xf32>
    tpu.vector_store %arg7[%c0_12, %c0_13], %12 {strides = array<i32>} : memref<256x64xf32, #tpu.memory_space<vmem>>, vector<256x64xf32>,
    return
  }
  func.func @transform_0(%arg0: i32) -> (i32, i32) {
    %c0_i32 = arith.constant 0 : i32
    %c0_i32_0 = arith.constant 0 : i32
    return %arg0, %c0_i32 : i32, i32
  }
  func.func @transform_1(%arg0: i32) -> (i32, i32) {
    %c0_i32 = arith.constant 0 : i32
    %c0_i32_0 = arith.constant 0 : i32
    %c0_i32_1 = arith.constant 0 : i32
    return %c0_i32, %c0_i32_0 : i32, i32
  }
  func.func @transform_2(%arg0: i32) -> (i32, i32) {
    %c0_i32 = arith.constant 0 : i32
    %c0_i32_0 = arith.constant 0 : i32
    %c0_i32_1 = arith.constant 0 : i32
    return %c0_i32, %c0_i32_0 : i32, i32
  }
  func.func @transform_3(%arg0: i32) -> (i32, i32) {
    %c0_i32 = arith.constant 0 : i32
    %c0_i32_0 = arith.constant 0 : i32
    return %arg0, %c0_i32 : i32, i32
  }
  func.func @transform_4(%arg0: i32) -> (i32, i32) {
    %c0_i32 = arith.constant 0 : i32
    %c0_i32_0 = arith.constant 0 : i32
    %c0_i32_1 = arith.constant 0 : i32
    return %c0_i32, %c0_i32_0 : i32, i32
  }
  func.func @transform_5(%arg0: i32) -> (i32, i32) {
    %c0_i32 = arith.constant 0 : i32
    %c0_i32_0 = arith.constant 0 : i32
    %c0_i32_1 = arith.constant 0 : i32
    return %c0_i32, %c0_i32_0 : i32, i32
  }
  func.func @transform_6(%arg0: i32) -> (i32, i32) {
    %c0_i32 = arith.constant 0 : i32
    %c0_i32_0 = arith.constant 0 : i32
    return %arg0, %c0_i32 : i32, i32
  }
}

module attributes {stable_mosaic.version = 11 : i64} {
  func.func @kernel(%arg0: i32, %arg1: i32, %arg2: memref<1x1x10x18x32xbf16, #tpu.memory_space<vmem>>, %arg3: memref<3x3x32x32xbf16, #tpu.memory_space<vmem>>, %arg4: memref<1x32xf32, #tpu.memory_space<vmem>>, %arg5: memref<1x32xf32, #tpu.memory_space<vmem>>, %arg6: memref<1x32xf32, #tpu.memory_space<vmem>>, %arg7: memref<1x8x16x32xbf16, #tpu.memory_space<vmem>>) attributes {dimension_semantics = [#tpu.dimension_semantics<parallel>, #tpu.dimension_semantics<parallel>], iteration_bounds = array<i64: 2, 2>, scalar_prefetch = 0 : i64, scratch_operands = 0 : i64, tpu.core_type = #tpu.core_type<tc>, window_params = [{transform_indices = @transform_0, window_bounds = array<i64: 1, 1, 10, 18, 32>}, {pipeline_mode = #tpu.pipeline_mode<synchronous>, transform_indices = @transform_1, window_bounds = array<i64: 3, 3, 32, 32>}, {pipeline_mode = #tpu.pipeline_mode<synchronous>, transform_indices = @transform_2, window_bounds = array<i64: 1, 32>}, {pipeline_mode = #tpu.pipeline_mode<synchronous>, transform_indices = @transform_3, window_bounds = array<i64: 1, 32>}, {pipeline_mode = #tpu.pipeline_mode<synchronous>, transform_indices = @transform_4, window_bounds = array<i64: 1, 32>}, {transform_indices = @transform_5, window_bounds = array<i64: 1, 8, 16, 32>}]} {
    %c0 = arith.constant 0 : index
    %c0_0 = arith.constant 0 : index
    %c0_1 = arith.constant 0 : index
    %c0_2 = arith.constant 0 : index
    %c0_3 = arith.constant 0 : index
    %0 = vector.load %arg2[%c0, %c0_0, %c0_1, %c0_2, %c0_3] : memref<1x1x10x18x32xbf16, #tpu.memory_space<vmem>>, vector<1x1x10x18x32xbf16>
    %1 = vector.shape_cast %0 : vector<1x1x10x18x32xbf16> to vector<10x18x32xbf16>
    %cst = arith.constant 0.000000e+00 : f32
    %2 = vector.broadcast %cst : f32 to vector<128x32xf32>
    %3 = vector.extract_strided_slice %1 {offsets = [0, 0, 0], sizes = [8, 16, 32], strides = [1, 1, 1]} : vector<10x18x32xbf16> to vector<8x16x32xbf16>
    %4 = vector.shape_cast %3 : vector<8x16x32xbf16> to vector<128x32xbf16>
    %c0_4 = arith.constant 0 : index
    %c0_5 = arith.constant 0 : index
    %c0_6 = arith.constant 0 : index
    %c0_7 = arith.constant 0 : index
    %5 = vector.load %arg3[%c0_4, %c0_5, %c0_6, %c0_7] : memref<3x3x32x32xbf16, #tpu.memory_space<vmem>>, vector<1x1x32x32xbf16>
    %6 = vector.shape_cast %5 : vector<1x1x32x32xbf16> to vector<32x32xbf16>
    %cst_8 = arith.constant dense<0.000000e+00> : vector<128x32xf32>
    %7 = tpu.matmul %4, %6, %cst_8 {dimension_numbers = #tpu.dot_dimension_numbers<[1], [0], [0], [1], [0, 0, 1, 1], [], []>} : vector<128x32xbf16>, vector<32x32xbf16>, vector<128x32xf32> -> vector<128x32xf32>
    %8 = arith.addf %2, %7 : vector<128x32xf32>
    %9 = vector.extract_strided_slice %1 {offsets = [0, 1, 0], sizes = [8, 16, 32], strides = [1, 1, 1]} : vector<10x18x32xbf16> to vector<8x16x32xbf16>
    %10 = vector.shape_cast %9 : vector<8x16x32xbf16> to vector<128x32xbf16>
    %c0_9 = arith.constant 0 : index
    %c1 = arith.constant 1 : index
    %c0_10 = arith.constant 0 : index
    %c0_11 = arith.constant 0 : index
    %11 = vector.load %arg3[%c0_9, %c1, %c0_10, %c0_11] : memref<3x3x32x32xbf16, #tpu.memory_space<vmem>>, vector<1x1x32x32xbf16>
    %12 = vector.shape_cast %11 : vector<1x1x32x32xbf16> to vector<32x32xbf16>
    %cst_12 = arith.constant dense<0.000000e+00> : vector<128x32xf32>
    %13 = tpu.matmul %10, %12, %cst_12 {dimension_numbers = #tpu.dot_dimension_numbers<[1], [0], [0], [1], [0, 0, 1, 1], [], []>} : vector<128x32xbf16>, vector<32x32xbf16>, vector<128x32xf32> -> vector<128x32xf32>
    %14 = arith.addf %8, %13 : vector<128x32xf32>
    %15 = vector.extract_strided_slice %1 {offsets = [0, 2, 0], sizes = [8, 16, 32], strides = [1, 1, 1]} : vector<10x18x32xbf16> to vector<8x16x32xbf16>
    %16 = vector.shape_cast %15 : vector<8x16x32xbf16> to vector<128x32xbf16>
    %c0_13 = arith.constant 0 : index
    %c2 = arith.constant 2 : index
    %c0_14 = arith.constant 0 : index
    %c0_15 = arith.constant 0 : index
    %17 = vector.load %arg3[%c0_13, %c2, %c0_14, %c0_15] : memref<3x3x32x32xbf16, #tpu.memory_space<vmem>>, vector<1x1x32x32xbf16>
    %18 = vector.shape_cast %17 : vector<1x1x32x32xbf16> to vector<32x32xbf16>
    %cst_16 = arith.constant dense<0.000000e+00> : vector<128x32xf32>
    %19 = tpu.matmul %16, %18, %cst_16 {dimension_numbers = #tpu.dot_dimension_numbers<[1], [0], [0], [1], [0, 0, 1, 1], [], []>} : vector<128x32xbf16>, vector<32x32xbf16>, vector<128x32xf32> -> vector<128x32xf32>
    %20 = arith.addf %14, %19 : vector<128x32xf32>
    %21 = vector.extract_strided_slice %1 {offsets = [1, 0, 0], sizes = [8, 16, 32], strides = [1, 1, 1]} : vector<10x18x32xbf16> to vector<8x16x32xbf16>
    %22 = vector.shape_cast %21 : vector<8x16x32xbf16> to vector<128x32xbf16>
    %c1_17 = arith.constant 1 : index
    %c0_18 = arith.constant 0 : index
    %c0_19 = arith.constant 0 : index
    %c0_20 = arith.constant 0 : index
    %23 = vector.load %arg3[%c1_17, %c0_18, %c0_19, %c0_20] : memref<3x3x32x32xbf16, #tpu.memory_space<vmem>>, vector<1x1x32x32xbf16>
    %24 = vector.shape_cast %23 : vector<1x1x32x32xbf16> to vector<32x32xbf16>
    %cst_21 = arith.constant dense<0.000000e+00> : vector<128x32xf32>
    %25 = tpu.matmul %22, %24, %cst_21 {dimension_numbers = #tpu.dot_dimension_numbers<[1], [0], [0], [1], [0, 0, 1, 1], [], []>} : vector<128x32xbf16>, vector<32x32xbf16>, vector<128x32xf32> -> vector<128x32xf32>
    %26 = arith.addf %20, %25 : vector<128x32xf32>
    %27 = vector.extract_strided_slice %1 {offsets = [1, 1, 0], sizes = [8, 16, 32], strides = [1, 1, 1]} : vector<10x18x32xbf16> to vector<8x16x32xbf16>
    %28 = vector.shape_cast %27 : vector<8x16x32xbf16> to vector<128x32xbf16>
    %c1_22 = arith.constant 1 : index
    %c1_23 = arith.constant 1 : index
    %c0_24 = arith.constant 0 : index
    %c0_25 = arith.constant 0 : index
    %29 = vector.load %arg3[%c1_22, %c1_23, %c0_24, %c0_25] : memref<3x3x32x32xbf16, #tpu.memory_space<vmem>>, vector<1x1x32x32xbf16>
    %30 = vector.shape_cast %29 : vector<1x1x32x32xbf16> to vector<32x32xbf16>
    %cst_26 = arith.constant dense<0.000000e+00> : vector<128x32xf32>
    %31 = tpu.matmul %28, %30, %cst_26 {dimension_numbers = #tpu.dot_dimension_numbers<[1], [0], [0], [1], [0, 0, 1, 1], [], []>} : vector<128x32xbf16>, vector<32x32xbf16>, vector<128x32xf32> -> vector<128x32xf32>
    %32 = arith.addf %26, %31 : vector<128x32xf32>
    %33 = vector.extract_strided_slice %1 {offsets = [1, 2, 0], sizes = [8, 16, 32], strides = [1, 1, 1]} : vector<10x18x32xbf16> to vector<8x16x32xbf16>
    %34 = vector.shape_cast %33 : vector<8x16x32xbf16> to vector<128x32xbf16>
    %c1_27 = arith.constant 1 : index
    %c2_28 = arith.constant 2 : index
    %c0_29 = arith.constant 0 : index
    %c0_30 = arith.constant 0 : index
    %35 = vector.load %arg3[%c1_27, %c2_28, %c0_29, %c0_30] : memref<3x3x32x32xbf16, #tpu.memory_space<vmem>>, vector<1x1x32x32xbf16>
    %36 = vector.shape_cast %35 : vector<1x1x32x32xbf16> to vector<32x32xbf16>
    %cst_31 = arith.constant dense<0.000000e+00> : vector<128x32xf32>
    %37 = tpu.matmul %34, %36, %cst_31 {dimension_numbers = #tpu.dot_dimension_numbers<[1], [0], [0], [1], [0, 0, 1, 1], [], []>} : vector<128x32xbf16>, vector<32x32xbf16>, vector<128x32xf32> -> vector<128x32xf32>
    %38 = arith.addf %32, %37 : vector<128x32xf32>
    %39 = vector.extract_strided_slice %1 {offsets = [2, 0, 0], sizes = [8, 16, 32], strides = [1, 1, 1]} : vector<10x18x32xbf16> to vector<8x16x32xbf16>
    %40 = vector.shape_cast %39 : vector<8x16x32xbf16> to vector<128x32xbf16>
    %c2_32 = arith.constant 2 : index
    %c0_33 = arith.constant 0 : index
    %c0_34 = arith.constant 0 : index
    %c0_35 = arith.constant 0 : index
    %41 = vector.load %arg3[%c2_32, %c0_33, %c0_34, %c0_35] : memref<3x3x32x32xbf16, #tpu.memory_space<vmem>>, vector<1x1x32x32xbf16>
    %42 = vector.shape_cast %41 : vector<1x1x32x32xbf16> to vector<32x32xbf16>
    %cst_36 = arith.constant dense<0.000000e+00> : vector<128x32xf32>
    %43 = tpu.matmul %40, %42, %cst_36 {dimension_numbers = #tpu.dot_dimension_numbers<[1], [0], [0], [1], [0, 0, 1, 1], [], []>} : vector<128x32xbf16>, vector<32x32xbf16>, vector<128x32xf32> -> vector<128x32xf32>
    %44 = arith.addf %38, %43 : vector<128x32xf32>
    %45 = vector.extract_strided_slice %1 {offsets = [2, 1, 0], sizes = [8, 16, 32], strides = [1, 1, 1]} : vector<10x18x32xbf16> to vector<8x16x32xbf16>
    %46 = vector.shape_cast %45 : vector<8x16x32xbf16> to vector<128x32xbf16>
    %c2_37 = arith.constant 2 : index
    %c1_38 = arith.constant 1 : index
    %c0_39 = arith.constant 0 : index
    %c0_40 = arith.constant 0 : index
    %47 = vector.load %arg3[%c2_37, %c1_38, %c0_39, %c0_40] : memref<3x3x32x32xbf16, #tpu.memory_space<vmem>>, vector<1x1x32x32xbf16>
    %48 = vector.shape_cast %47 : vector<1x1x32x32xbf16> to vector<32x32xbf16>
    %cst_41 = arith.constant dense<0.000000e+00> : vector<128x32xf32>
    %49 = tpu.matmul %46, %48, %cst_41 {dimension_numbers = #tpu.dot_dimension_numbers<[1], [0], [0], [1], [0, 0, 1, 1], [], []>} : vector<128x32xbf16>, vector<32x32xbf16>, vector<128x32xf32> -> vector<128x32xf32>
    %50 = arith.addf %44, %49 : vector<128x32xf32>
    %51 = vector.extract_strided_slice %1 {offsets = [2, 2, 0], sizes = [8, 16, 32], strides = [1, 1, 1]} : vector<10x18x32xbf16> to vector<8x16x32xbf16>
    %52 = vector.shape_cast %51 : vector<8x16x32xbf16> to vector<128x32xbf16>
    %c2_42 = arith.constant 2 : index
    %c2_43 = arith.constant 2 : index
    %c0_44 = arith.constant 0 : index
    %c0_45 = arith.constant 0 : index
    %53 = vector.load %arg3[%c2_42, %c2_43, %c0_44, %c0_45] : memref<3x3x32x32xbf16, #tpu.memory_space<vmem>>, vector<1x1x32x32xbf16>
    %54 = vector.shape_cast %53 : vector<1x1x32x32xbf16> to vector<32x32xbf16>
    %cst_46 = arith.constant dense<0.000000e+00> : vector<128x32xf32>
    %55 = tpu.matmul %52, %54, %cst_46 {dimension_numbers = #tpu.dot_dimension_numbers<[1], [0], [0], [1], [0, 0, 1, 1], [], []>} : vector<128x32xbf16>, vector<32x32xbf16>, vector<128x32xf32> -> vector<128x32xf32>
    %56 = arith.addf %50, %55 : vector<128x32xf32>
    %c0_47 = arith.constant 0 : index
    %c0_48 = arith.constant 0 : index
    %57 = vector.load %arg4[%c0_47, %c0_48] : memref<1x32xf32, #tpu.memory_space<vmem>>, vector<1x32xf32>
    %58 = vector.broadcast %57 : vector<1x32xf32> to vector<128x32xf32>
    %59 = arith.addf %56, %58 : vector<128x32xf32>
    %c0_49 = arith.constant 0 : index
    %c0_50 = arith.constant 0 : index
    %60 = vector.load %arg5[%c0_49, %c0_50] : memref<1x32xf32, #tpu.memory_space<vmem>>, vector<1x32xf32>
    %61 = vector.broadcast %60 : vector<1x32xf32> to vector<128x32xf32>
    %62 = arith.mulf %59, %61 : vector<128x32xf32>
    %c0_51 = arith.constant 0 : index
    %c0_52 = arith.constant 0 : index
    %63 = vector.load %arg6[%c0_51, %c0_52] : memref<1x32xf32, #tpu.memory_space<vmem>>, vector<1x32xf32>
    %64 = vector.broadcast %63 : vector<1x32xf32> to vector<128x32xf32>
    %65 = arith.addf %62, %64 : vector<128x32xf32>
    %cst_53 = arith.constant 0.000000e+00 : f32
    %66 = vector.broadcast %cst_53 : f32 to vector<128x32xf32>
    %67 = arith.maximumf %65, %66 : vector<128x32xf32>
    %68 = vector.shape_cast %67 : vector<128x32xf32> to vector<8x16x32xf32>
    %69 = arith.truncf %68 : vector<8x16x32xf32> to vector<8x16x32xbf16>
    %c0_54 = arith.constant 0 : index
    %c0_55 = arith.constant 0 : index
    %c0_56 = arith.constant 0 : index
    %c0_57 = arith.constant 0 : index
    %70 = vector.load %arg7[%c0_54, %c0_55, %c0_56, %c0_57] : memref<1x8x16x32xbf16, #tpu.memory_space<vmem>>, vector<1x8x16x32xbf16>
    %71 = vector.shape_cast %70 : vector<1x8x16x32xbf16> to vector<8x16x32xbf16>
    %72 = vector.shape_cast %69 : vector<8x16x32xbf16> to vector<1x8x16x32xbf16>
    tpu.vector_store %arg7[%c0_54, %c0_55, %c0_56, %c0_57], %72 {strides = array<i32>} : memref<1x8x16x32xbf16, #tpu.memory_space<vmem>>, vector<1x8x16x32xbf16>,
    return
  }
  func.func @transform_0(%arg0: i32, %arg1: i32) -> (i32, i32, i32, i32, i32) {
    %c0_i32 = arith.constant 0 : i32
    %c0_i32_0 = arith.constant 0 : i32
    %c0_i32_1 = arith.constant 0 : i32
    %c0_i32_2 = arith.constant 0 : i32
    return %arg0, %arg1, %c0_i32, %c0_i32_0, %c0_i32_1 : i32, i32, i32, i32, i32
  }
  func.func @transform_1(%arg0: i32, %arg1: i32) -> (i32, i32, i32, i32) {
    %c0_i32 = arith.constant 0 : i32
    %c0_i32_0 = arith.constant 0 : i32
    %c0_i32_1 = arith.constant 0 : i32
    %c0_i32_2 = arith.constant 0 : i32
    %c0_i32_3 = arith.constant 0 : i32
    return %c0_i32, %c0_i32_0, %c0_i32_1, %c0_i32_2 : i32, i32, i32, i32
  }
  func.func @transform_2(%arg0: i32, %arg1: i32) -> (i32, i32) {
    %c0_i32 = arith.constant 0 : i32
    %c0_i32_0 = arith.constant 0 : i32
    %c0_i32_1 = arith.constant 0 : i32
    return %c0_i32, %c0_i32_0 : i32, i32
  }
  func.func @transform_3(%arg0: i32, %arg1: i32) -> (i32, i32) {
    %c0_i32 = arith.constant 0 : i32
    %c0_i32_0 = arith.constant 0 : i32
    %c0_i32_1 = arith.constant 0 : i32
    return %c0_i32, %c0_i32_0 : i32, i32
  }
  func.func @transform_4(%arg0: i32, %arg1: i32) -> (i32, i32) {
    %c0_i32 = arith.constant 0 : i32
    %c0_i32_0 = arith.constant 0 : i32
    %c0_i32_1 = arith.constant 0 : i32
    return %c0_i32, %c0_i32_0 : i32, i32
  }
  func.func @transform_5(%arg0: i32, %arg1: i32) -> (i32, i32, i32, i32) {
    %c0_i32 = arith.constant 0 : i32
    %c0_i32_0 = arith.constant 0 : i32
    %c0_i32_1 = arith.constant 0 : i32
    return %arg0, %arg1, %c0_i32, %c0_i32_0 : i32, i32, i32, i32
  }
}

</mosaic_0001>

<bundles_post_ra>
// kernel: residual_forward.3
= control target key start
LH: loop header
LB: loop body
LE: loop exit
PB: predicated region body
PF: predicated region fallthrough
CT: control target
= control target key end

     0   :  { %s1326_s24 = smov 0   ;;  %s1641_s0 = inlined_call_operand.vmem [shape: bf16[512,32], index: 0, kind: input, shape index: {}]   ;;  %s1642_s1 = inlined_call_operand.vmem [shape: f32[1,32], index: 1, kind: input, shape index: {}]   ;;  %s1643_s2 = inlined_call_operand.vmem [shape: f32[1,32], index: 2, kind: input, shape index: {}]   ;;  %s1644_s3 = inlined_call_operand.vmem [shape: bf16[32,32], index: 3, kind: input, shape index: {}]   ;;  %s1645_s4 = inlined_call_operand.vmem [shape: f32[1,32], index: 4, kind: input, shape index: {}]   ;;  %s1646_s5 = inlined_call_operand.vmem [shape: f32[1,32], index: 5, kind: input, shape index: {}]   ;;  %s1647_s6 = inlined_call_operand.vmem [shape: f32[1,32], index: 6, kind: input, shape index: {}]   ;;  %s1648_s7 = inlined_call_operand.vmem [shape: bf16[512,32], index: 7, kind: output, shape index: {}]  }
   0x1 LB: > { %s1033_s25 = sadd.s32 4294967295, %s1284_s24   ;;  %p1037_p0 = scmp.ge.s32.totalorder %s1284_s24, 1  ;;  %s1284_s24 = sphi %s1326_s24, %s17_s24  }
   0x2   : > { %p238_p1 = scmp.lt.s32.totalorder %s1284_s24, 3 }
   0x4   : > { %p239_p2 = pnand %p1037_p0, %p238_p1 }
   0x5   : > { %v1276_v0 = vld [vmem:[%s1644_s3] sm:$0xff] (!%p239_p2)   ;;  %s1038_s28 = sshll.u32 (!%p239_p2), %s1033_s25, 5  ;;  %v1277_v1 = vld [vmem:[%s1644_s3 + $0x8] sm:$0xff] (!%p239_p2)   ;;  %vm496_vm0 = vcmask (!%p239_p2), 261120   ;;  %vm944_vm1 = vcmask (!%p239_p2), 257024  }
   0x6   : > { %242 = sbr.rel (%p239_p2) target bundleno = 287 (0x11f), region = 48  ;;  %p271_p3 = scmp.lt.s32.totalorder (!%p239_p2), %s1038_s28, 63  ;;  %1228 = vmatprep.subr.bf16.mxu0 (!%p239_p2), %v1276_v0  ;;  %1264 = vmatprep.subr.bf16.mxu1 (!%p239_p2), %v1276_v0  ;;  %v1353_v2 = vld [vmem:[%s1642_s1] ss:$0 sm:$0xff] (!%p239_p2) }
   0x7   : > { %1229 = vmatpush3.bf16.msra.mxu0 (!%p239_p2), %v1276_v0  ;;  %1266 = vmatpush3.bf16.msra.mxu1 (!%p239_p2), %v1276_v0  ;;  %v1362_v11 = vld [vmem:[%s1643_s2] ss:$0 sm:$0xff] (!%p239_p2) }
   0x8   : > { %1230 = vmatprep.subr.bf16.mxu0 (!%p239_p2), %v1277_v1  ;;  %1265 = vmatprep.subr.bf16.mxu1 (!%p239_p2), %v1277_v1 }
   0xb   : > { %1231 = vmatpush3.bf16.msra.mxu0 (!%p239_p2), %v1277_v1  ;;  %1267 = vmatpush3.bf16.msra.mxu1 (!%p239_p2), %v1277_v1 }
   0xd   : > { %s1650_s28 = smov (!%p271_p3, %s1038_s28), 63 }
   0xe   : > { %s1039_s8 = sshll.u32 %s1650_s28, 2 }
   0xf   : > { %s1348_s11 = scalar_lea.vmem %s1641_s0, %s1039_s8  ;;  %s1498_s25 = scalar_lea.vmem %s1648_s7, %s1039_s8 }
  0x10   : > { %v1132_v3 = vld [vmem:[%s1348_s11] sm:$0xff]   ;;  %v1195_v5 = vld [vmem:[%s1348_s11 + $0x8] sm:$0xff]   ;;  %v1196_v32 = vld [vmem:[%s1348_s11 + $0x10] sm:$0xff]  }
  0x11   : > { %v1202_v4 = vld [vmem:[%s1348_s11 + $0x40] sm:$0xff]   ;;  %v1133_v6 = vunpack.c.l.bf16 %v1132_v3  ;;  %v1134_v7 = vunpack.c.h.bf16 %v1132_v3  ;;  %v1203_v10 = vld [vmem:[%s1348_s11 + $0x48] sm:$0xff]   ;;  %v1137_v12 = vunpack.c.l.bf16 %v1195_v5  ;;  %v1138_v13 = vunpack.c.h.bf16 %v1195_v5  ;;  %v1204_v37 = vld [vmem:[%s1348_s11 + $0x50] sm:$0xff]  }
  0x12   : > { %v1165_v8 = vunpack.c.l.bf16 %v1202_v4  ;;  %v1166_v9 = vunpack.c.h.bf16 %v1202_v4  ;;  %v1169_v14 = vunpack.c.l.bf16 %v1203_v10  ;;  %v1170_v15 = vunpack.c.h.bf16 %v1203_v10  ;;  %v1197_v42 = vld [vmem:[%s1348_s11 + $0x18] sm:$0xff]   ;;  %v1198_v5 = vld [vmem:[%s1348_s11 + $0x20] sm:$0xff]  }
  0x13   : > { %v354_v16 = vmul.f32 %v1133_v6, %v1353_v2  ;;  %v355_v17 = vmul.f32 %v1134_v7, %v1353_v2  ;;  %v356_v20 = vmul.f32 %v1137_v12, %v1353_v2  ;;  %v357_v21 = vmul.f32 %v1138_v13, %v1353_v2  ;;  %v1205_v47 = vld [vmem:[%s1348_s11 + $0x58] sm:$0xff]  }
  0x14   : > { %v370_v18 = vmul.f32 %v1165_v8, %v1353_v2  ;;  %v371_v19 = vmul.f32 %v1166_v9, %v1353_v2  ;;  %v372_v22 = vmul.f32 %v1169_v14, %v1353_v2  ;;  %v373_v23 = vmul.f32 %v1170_v15, %v1353_v2  ;;  %v1206_v15 = vld [vmem:[%s1348_s11 + $0x60] sm:$0xff]  }
  0x15   : > { %v393_v24 = vadd.f32 %v1362_v11, %v354_v16  ;;  %v394_v25 = vadd.f32 %v1362_v11, %v355_v17  ;;  %v395_v28 = vadd.f32 %v1362_v11, %v356_v20  ;;  %v396_v29 = vadd.f32 %v1362_v11, %v357_v21  ;;  %v1199_v20 = vld [vmem:[%s1348_s11 + $0x28] sm:$0xff]  }
  0x16   : > { %v409_v26 = vadd.f32 %v1362_v11, %v370_v18  ;;  %v410_v27 = vadd.f32 %v1362_v11, %v371_v19  ;;  %v411_v30 = vadd.f32 %v1362_v11, %v372_v22  ;;  %v412_v31 = vadd.f32 %v1362_v11, %v373_v23 }
  0x17   : > { %v425_v33 = vmax.f32 %v393_v24, 0.0  ;;  %v426_v34 = vmax.f32 %v394_v25, 0.0  ;;  %v427_v38 = vmax.f32 %v395_v28, 0.0  ;;  %v428_v39 = vmax.f32 %v396_v29, 0.0  ;;  %v1207_v25 = vld [vmem:[%s1348_s11 + $0x68] sm:$0xff]  }
  0x18   : > { %v441_v35 = vmax.f32 %v409_v26, 0.0  ;;  %v442_v36 = vmax.f32 %v410_v27, 0.0  ;;  %v443_v40 = vmax.f32 %v411_v30, 0.0  ;;  %v444_v41 = vmax.f32 %v412_v31, 0.0 }
  0x19   : > { %v457_v43 = vpack.c.bf16 %v426_v34, %v425_v33  ;;  %v1141_v45 = vunpack.c.l.bf16 %v1196_v32  ;;  %v1142_v46 = vunpack.c.h.bf16 %v1196_v32  ;;  %v458_v48 = vpack.c.bf16 %v428_v39, %v427_v38 }
  0x1a   : > { %v465_v44 = vpack.c.bf16 %v442_v36, %v441_v35  ;;  %v466_v49 = vpack.c.bf16 %v444_v41, %v443_v40  ;;  %v1173_v50 = vunpack.c.l.bf16 %v1204_v37  ;;  %v1174_v51 = vunpack.c.h.bf16 %v1204_v37 }
  0x1b   : > { %1232 = vmatprep.mubr.msk.bf16.mxu0 %vm496_vm0, %v457_v43  ;;  %v358_v52 = vmul.f32 %v1141_v45, %v1353_v2  ;;  %v359_v53 = vmul.f32 %v1142_v46, %v1353_v2  ;;  %v1145_v54 = vunpack.c.l.bf16 %v1197_v42  ;;  %v1146_v55 = vunpack.c.h.bf16 %v1197_v42  ;;  %v1200_v42 = vld [vmem:[%s1348_s11 + $0x30] sm:$0xff]  }
  0x1c   : > { %1248 = vmatprep.mubr.msk.bf16.mxu1 %vm496_vm0, %v465_v44  ;;  %1233 = vmatmul.mubr.msk.bf16.vlgmr.msra.gmra.mrb[0].mxu0 %vm496_vm0, %v458_v48  ;;  %v374_v56 = vmul.f32 %v1173_v50, %v1353_v2  ;;  %v375_v57 = vmul.f32 %v1174_v51, %v1353_v2  ;;  %v1177_v58 = vunpack.c.l.bf16 %v1205_v47  ;;  %v1178_v59 = vunpack.c.h.bf16 %v1205_v47 }
  0x1d   : > { %1249 = vmatmul.mubr.msk.bf16.vlgmr.msra.gmra.mrb[0].mxu1 %vm496_vm0, %v466_v49  ;;  %v397_v60 = vadd.f32 %v1362_v11, %v358_v52  ;;  %v398_v61 = vadd.f32 %v1362_v11, %v359_v53  ;;  %v360_v62 = vmul.f32 %v1145_v54, %v1353_v2  ;;  %v361_v63 = vmul.f32 %v1146_v55, %v1353_v2  ;;  %v1208_v55 = vld [vmem:[%s1348_s11 + $0x70] sm:$0xff]  }
  0x1e   : > { %v413_v0 = vadd.f32 %v1362_v11, %v374_v56  ;;  %v414_v1 = vadd.f32 %v1362_v11, %v375_v57  ;;  %v376_v3 = vmul.f32 %v1177_v58, %v1353_v2  ;;  %v377_v4 = vmul.f32 %v1178_v59, %v1353_v2 }
  0x1f   : > { %v429_v6 = vmax.f32 %v397_v60, 0.0  ;;  %v430_v7 = vmax.f32 %v398_v61, 0.0  ;;  %v399_v8 = vadd.f32 %v1362_v11, %v360_v62  ;;  %v400_v9 = vadd.f32 %v1362_v11, %v361_v63  ;;  %v1201_v60 = vld [vmem:[%s1348_s11 + $0x38] sm:$0xff]  }
  0x20   : > { %v445_v10 = vmax.f32 %v413_v0, 0.0  ;;  %v446_v12 = vmax.f32 %v414_v1, 0.0  ;;  %v415_v13 = vadd.f32 %v1362_v11, %v376_v3  ;;  %v416_v14 = vadd.f32 %v1362_v11, %v377_v4  ;;  %v1209_v1 = vld [vmem:[%s1348_s11 + $0x78] sm:$0xff]  }
  0x21   : > { %v459_v16 = vpack.c.bf16 %v430_v7, %v429_v6  ;;  %v431_v17 = vmax.f32 %v399_v8, 0.0  ;;  %v432_v18 = vmax.f32 %v400_v9, 0.0  ;;  %v1149_v19 = vunpack.c.l.bf16 %v1198_v5 }
  0x22   : > { %v467_v21 = vpack.c.bf16 %v446_v12, %v445_v10  ;;  %v447_v22 = vmax.f32 %v415_v13, 0.0  ;;  %v448_v23 = vmax.f32 %v416_v14, 0.0  ;;  %v1150_v24 = vunpack.c.h.bf16 %v1198_v5 }
  0x23   : > { %1236 = vmatprep.mubr.msk.bf16.mxu0 %vm496_vm0, %v459_v16  ;;  %v460_v26 = vpack.c.bf16 %v432_v18, %v431_v17  ;;  %v362_v27 = vmul.f32 %v1149_v19, %v1353_v2  ;;  %v1181_v28 = vunpack.c.l.bf16 %v1206_v15  ;;  %v1182_v29 = vunpack.c.h.bf16 %v1206_v15 }
  0x24   : > { %1252 = vmatprep.mubr.msk.bf16.mxu1 %vm496_vm0, %v467_v21  ;;  %v468_v30 = vpack.c.bf16 %v448_v23, %v447_v22  ;;  %v363_v31 = vmul.f32 %v1150_v24, %v1353_v2  ;;  %v1153_v32 = vunpack.c.l.bf16 %v1199_v20  ;;  %v1154_v33 = vunpack.c.h.bf16 %v1199_v20 }
  0x25   : > { %1237 = vmatmul.mubr.msk.bf16.gmra.mrb[4].mxu0 %vm496_vm0, %v460_v26  ;;  %v401_v34 = vadd.f32 %v1362_v11, %v362_v27  ;;  %v378_v35 = vmul.f32 %v1181_v28, %v1353_v2  ;;  %v379_v36 = vmul.f32 %v1182_v29, %v1353_v2  ;;  %v1185_v37 = vunpack.c.l.bf16 %v1207_v25 }
  0x26   : > { %1253 = vmatmul.mubr.msk.bf16.gmra.mrb[4].mxu1 %vm496_vm0, %v468_v30  ;;  %v402_v38 = vadd.f32 %v1362_v11, %v363_v31  ;;  %v364_v39 = vmul.f32 %v1153_v32, %v1353_v2  ;;  %v365_v40 = vmul.f32 %v1154_v33, %v1353_v2  ;;  %v1186_v41 = vunpack.c.h.bf16 %v1207_v25 }
  0x27   : > { %v433_v43 = vmax.f32 %v401_v34, 0.0  ;;  %v417_v44 = vadd.f32 %v1362_v11, %v378_v35  ;;  %v418_v45 = vadd.f32 %v1362_v11, %v379_v36  ;;  %v380_v46 = vmul.f32 %v1185_v37, %v1353_v2 }
  0x28   : > { %v434_v47 = vmax.f32 %v402_v38, 0.0  ;;  %v403_v48 = vadd.f32 %v1362_v11, %v364_v39  ;;  %v404_v49 = vadd.f32 %v1362_v11, %v365_v40  ;;  %v381_v50 = vmul.f32 %v1186_v41, %v1353_v2 }
  0x29   : > { %v449_v51 = vmax.f32 %v417_v44, 0.0  ;;  %v450_v52 = vmax.f32 %v418_v45, 0.0  ;;  %v419_v53 = vadd.f32 %v1362_v11, %v380_v46  ;;  %v1157_v54 = vunpack.c.l.bf16 %v1200_v42  ;;  %v1471_v46 = vld [vmem:[%s1647_s6] ss:$0 sm:$0xff] }
  0x2a   : > { %v461_v56 = vpack.c.bf16 %v434_v47, %v433_v43  ;;  %v435_v57 = vmax.f32 %v403_v48, 0.0  ;;  %v436_v58 = vmax.f32 %v404_v49, 0.0  ;;  %v420_v59 = vadd.f32 %v1362_v11, %v381_v50 }
  0x2b   : > { %v469_v61 = vpack.c.bf16 %v450_v52, %v449_v51  ;;  %v451_v62 = vmax.f32 %v419_v53, 0.0  ;;  %v1158_v63 = vunpack.c.h.bf16 %v1200_v42  ;;  %v366_v0 = vmul.f32 %v1157_v54, %v1353_v2 }
  0x2c   : > { %1240 = vmatprep.mubr.msk.bf16.mxu0 %vm496_vm0, %v461_v56  ;;  %v462_v3 = vpack.c.bf16 %v436_v58, %v435_v57  ;;  %v452_v4 = vmax.f32 %v420_v59, 0.0  ;;  %v1189_v5 = vunpack.c.l.bf16 %v1208_v55  ;;  %v1190_v6 = vunpack.c.h.bf16 %v1208_v55 }
  0x2d   : > { %1256 = vmatprep.mubr.msk.bf16.mxu1 %vm496_vm0, %v469_v61  ;;  %v367_v7 = vmul.f32 %v1158_v63, %v1353_v2  ;;  %v405_v8 = vadd.f32 %v1362_v11, %v366_v0  ;;  %v1161_v9 = vunpack.c.l.bf16 %v1201_v60  ;;  %v1162_v10 = vunpack.c.h.bf16 %v1201_v60 }
  0x2e   : > { %1241 = vmatmul.mubr.msk.bf16.gmra.mrb[8].mxu0 %vm496_vm0, %v462_v3  ;;  %v470_v12 = vpack.c.bf16 %v452_v4, %v451_v62  ;;  %v382_v13 = vmul.f32 %v1189_v5, %v1353_v2  ;;  %v383_v14 = vmul.f32 %v1190_v6, %v1353_v2  ;;  %v1193_v15 = vunpack.c.l.bf16 %v1209_v1 }
  0x2f   : > { %v406_v16 = vadd.f32 %v1362_v11, %v367_v7  ;;  %v437_v17 = vmax.f32 %v405_v8, 0.0  ;;  %v368_v18 = vmul.f32 %v1161_v9, %v1353_v2  ;;  %v369_v19 = vmul.f32 %v1162_v10, %v1353_v2 }
  0x30   : > { %1257 = vmatmul.mubr.msk.bf16.gmra.mrb[8].mxu1 %vm496_vm0, %v470_v12  ;;  %v421_v20 = vadd.f32 %v1362_v11, %v382_v13  ;;  %v422_v21 = vadd.f32 %v1362_v11, %v383_v14  ;;  %v1194_v22 = vunpack.c.h.bf16 %v1209_v1  ;;  %v384_v23 = vmul.f32 %v1193_v15, %v1353_v2 }
  0x31   : > { %v438_v24 = vmax.f32 %v406_v16, 0.0  ;;  %v407_v25 = vadd.f32 %v1362_v11, %v368_v18  ;;  %v408_v26 = vadd.f32 %v1362_v11, %v369_v19 }
  0x32   : > { %v453_v27 = vmax.f32 %v421_v20, 0.0  ;;  %v454_v28 = vmax.f32 %v422_v21, 0.0  ;;  %v385_v29 = vmul.f32 %v1194_v22, %v1353_v2  ;;  %v423_v30 = vadd.f32 %v1362_v11, %v384_v23  ;;  %v1459_v2 = vld [vmem:[%s1645_s4] ss:$0 sm:$0xff] }
  0x33   : > { %v463_v31 = vpack.c.bf16 %v438_v24, %v437_v17  ;;  %v439_v32 = vmax.f32 %v407_v25, 0.0  ;;  %v440_v33 = vmax.f32 %v408_v26, 0.0 }
  0x34   : > { %v471_v34 = vpack.c.bf16 %v454_v28, %v453_v27  ;;  %v424_v35 = vadd.f32 %v1362_v11, %v385_v29  ;;  %v455_v36 = vmax.f32 %v423_v30, 0.0  ;;  %v1464_v11 = vld [vmem:[%s1646_s5] ss:$0 sm:$0xff] }
  0x35   : > { %1244 = vmatprep.mubr.msk.bf16.mxu0 %vm496_vm0, %v463_v31  ;;  %v464_v37 = vpack.c.bf16 %v440_v33, %v439_v32 }
  0x36   : > { %1260 = vmatprep.mubr.msk.bf16.mxu1 %vm496_vm0, %v471_v34  ;;  %v456_v38 = vmax.f32 %v424_v35, 0.0 }
  0x37   : > { %1245 = vmatmul.mubr.msk.bf16.gmra.mrb[12].mxu0 %vm496_vm0, %v464_v37 }
  0x38   : > { %v472_v39 = vpack.c.bf16 %v456_v38, %v455_v36 }
  0x3a   : > { %1261 = vmatmul.mubr.msk.bf16.gmra.mrb[12].mxu1 %vm496_vm0, %v472_v39 }
  0xef   : > { %v1234_v40 = vpop.f32.mrb[0].mxu0 }
  0xf0   : > { %v1250_v41 = vpop.f32.mrb[0].mxu1  ;;  %v588_v42 = vadd.f32 %v1234_v40, %v1459_v2  ;;  %v579_v44 = vpop.f32.mrb[1].mxu0 }
  0xf1   : > { %v652_v43 = vadd.f32 %v1250_v41, %v1459_v2  ;;  %v643_v45 = vpop.f32.mrb[1].mxu1  ;;  %v580_v47 = vadd.f32 %v1459_v2, %v579_v44  ;;  %v1235_v49 = vpop.f32.mrb[2].mxu0 }
  0xf2   : > { %v644_v48 = vadd.f32 %v1459_v2, %v643_v45  ;;  %v1251_v50 = vpop.f32.mrb[2].mxu1  ;;  %v715_v51 = vmul.f32 %v1464_v11, %v588_v42  ;;  %v591_v53 = vadd.f32 %v1235_v49, %v1459_v2  ;;  %v582_v55 = vpop.f32.mrb[3].mxu0 }
  0xf3   : > { %v731_v52 = vmul.f32 %v1464_v11, %v652_v43  ;;  %v655_v54 = vadd.f32 %v1251_v50, %v1459_v2  ;;  %v646_v56 = vpop.f32.mrb[3].mxu1  ;;  %v713_v57 = vmul.f32 %v1464_v11, %v580_v47  ;;  %v583_v59 = vadd.f32 %v1459_v2, %v582_v55 }
  0xf4   : > { %v729_v58 = vmul.f32 %v1464_v11, %v644_v48  ;;  %v647_v60 = vadd.f32 %v1459_v2, %v646_v56  ;;  %v754_v61 = vadd.f32 %v1471_v46, %v715_v51  ;;  %v716_v63 = vmul.f32 %v1464_v11, %v591_v53 }
  0xf5   : > { %v770_v62 = vadd.f32 %v1471_v46, %v731_v52  ;;  %v732_v0 = vmul.f32 %v1464_v11, %v655_v54  ;;  %v752_v1 = vadd.f32 %v1471_v46, %v713_v57  ;;  %v714_v4 = vmul.f32 %v1464_v11, %v583_v59 }
  0xf6   : > { %v768_v3 = vadd.f32 %v1471_v46, %v729_v58  ;;  %v730_v5 = vmul.f32 %v1464_v11, %v647_v60  ;;  %v786_v6 = vmax.f32 %v754_v61, 0.0  ;;  %v755_v8 = vadd.f32 %v1471_v46, %v716_v63 }
  0xf7   : > { %v802_v7 = vmax.f32 %v770_v62, 0.0  ;;  %v771_v9 = vadd.f32 %v1471_v46, %v732_v0  ;;  %v784_v10 = vmax.f32 %v752_v1, 0.0  ;;  %v753_v13 = vadd.f32 %v1471_v46, %v714_v4 }
  0xf8   : > { %v800_v12 = vmax.f32 %v768_v3, 0.0  ;;  %v769_v14 = vadd.f32 %v1471_v46, %v730_v5  ;;  %v1101_v15 = vpack.c.bf16 %v786_v6, %v786_v6  ;;  %v787_v17 = vmax.f32 %v755_v8, 0.0  ;;  %v1238_v19 = vpop.f32.mrb[4].mxu0 }
  0xf9   : > { %v1117_v16 = vpack.c.bf16 %v802_v7, %v802_v7  ;;  %v803_v18 = vmax.f32 %v771_v9, 0.0  ;;  %v1099_v20 = vpack.c.bf16 %v784_v10, %v784_v10  ;;  %v785_v22 = vmax.f32 %v753_v13, 0.0  ;;  %v1254_v24 = vpop.f32.mrb[4].mxu1  ;;  %v595_v25 = vpop.f32.mrb[5].mxu0 }
  0xfa   : > { %v1115_v21 = vpack.c.bf16 %v800_v12, %v800_v12  ;;  %v801_v23 = vmax.f32 %v769_v14, 0.0  ;;  %947 = vst.msk [vmem:[%s1498_s25 + $0x8] sm:$0xf] %vm944_vm1, %v1101_v15  ;;  %v1102_v26 = vpack.c.bf16 %v787_v17, %v787_v17  ;;  %v604_v28 = vadd.f32 %v1238_v19, %v1459_v2  ;;  %v659_v30 = vpop.f32.mrb[5].mxu1  ;;  %v1239_v31 = vpop.f32.mrb[6].mxu0 }
  0xfb   : > { %963 = vst.msk [vmem:[%s1498_s25 + $0x48] sm:$0xf] %vm944_vm1, %v1117_v16  ;;  %v1118_v27 = vpack.c.bf16 %v803_v18, %v803_v18  ;;  %v668_v29 = vadd.f32 %v1254_v24, %v1459_v2  ;;  %945 = vst.msk [vmem:[%s1498_s25] sm:$0xf] %vm944_vm1, %v1099_v20  ;;  %v1100_v32 = vpack.c.bf16 %v785_v22, %v785_v22  ;;  %v1255_v36 = vpop.f32.mrb[6].mxu1  ;;  %v598_v37 = vpop.f32.mrb[7].mxu0 }
  0xfc   : > { %961 = vst.msk [vmem:[%s1498_s25 + $0x40] sm:$0xf] %vm944_vm1, %v1115_v21  ;;  %v1116_v33 = vpack.c.bf16 %v801_v23, %v801_v23  ;;  %v596_v34 = vadd.f32 %v1459_v2, %v595_v25  ;;  %v660_v35 = vadd.f32 %v1459_v2, %v659_v30  ;;  %948 = vst.msk [vmem:[%s1498_s25 + $0xc] sm:$0xf] %vm944_vm1, %v1102_v26  ;;  %v662_v42 = vpop.f32.mrb[7].mxu1 }
  0xfd   : > { %964 = vst.msk [vmem:[%s1498_s25 + $0x4c] sm:$0xf] %vm944_vm1, %v1118_v27  ;;  %v719_v38 = vmul.f32 %v1464_v11, %v604_v28  ;;  %v735_v39 = vmul.f32 %v1464_v11, %v668_v29  ;;  %v607_v40 = vadd.f32 %v1239_v31, %v1459_v2  ;;  %v671_v41 = vadd.f32 %v1255_v36, %v1459_v2 }
  0xfe   : > { %946 = vst.msk [vmem:[%s1498_s25 + $0x4] sm:$0xf] %vm944_vm1, %v1100_v32  ;;  %962 = vst.msk [vmem:[%s1498_s25 + $0x44] sm:$0xf] %vm944_vm1, %v1116_v33  ;;  %v717_v43 = vmul.f32 %v1464_v11, %v596_v34  ;;  %v733_v44 = vmul.f32 %v1464_v11, %v660_v35  ;;  %v599_v45 = vadd.f32 %v1459_v2, %v598_v37 }
  0xff   : > { %v663_v47 = vadd.f32 %v1459_v2, %v662_v42  ;;  %v758_v48 = vadd.f32 %v1471_v46, %v719_v38  ;;  %v774_v49 = vadd.f32 %v1471_v46, %v735_v39  ;;  %v720_v50 = vmul.f32 %v1464_v11, %v607_v40 }
 0x100   : > { %v736_v51 = vmul.f32 %v1464_v11, %v671_v41  ;;  %v756_v52 = vadd.f32 %v1471_v46, %v717_v43  ;;  %v772_v53 = vadd.f32 %v1471_v46, %v733_v44  ;;  %v718_v54 = vmul.f32 %v1464_v11, %v599_v45 }
 0x101   : > { %v734_v55 = vmul.f32 %v1464_v11, %v663_v47  ;;  %v790_v56 = vmax.f32 %v758_v48, 0.0  ;;  %v806_v57 = vmax.f32 %v774_v49, 0.0  ;;  %v759_v58 = vadd.f32 %v1471_v46, %v720_v50  ;;  %v1242_v0 = vpop.f32.mrb[8].mxu0 }
 0x102   : > { %v775_v59 = vadd.f32 %v1471_v46, %v736_v51  ;;  %v788_v60 = vmax.f32 %v756_v52, 0.0  ;;  %v804_v61 = vmax.f32 %v772_v53, 0.0  ;;  %v757_v62 = vadd.f32 %v1471_v46, %v718_v54  ;;  %v611_v6 = vpop.f32.mrb[9].mxu0 }
 0x103   : > { %v773_v63 = vadd.f32 %v1471_v46, %v734_v55  ;;  %v1105_v1 = vpack.c.bf16 %v790_v56, %v790_v56  ;;  %v1121_v3 = vpack.c.bf16 %v806_v57, %v806_v57  ;;  %v791_v4 = vmax.f32 %v759_v58, 0.0  ;;  %v1258_v12 = vpop.f32.mrb[8].mxu1  ;;  %v1243_v13 = vpop.f32.mrb[10].mxu0 }
 0x104   : > { %v807_v5 = vmax.f32 %v775_v59, 0.0  ;;  %v1103_v7 = vpack.c.bf16 %v788_v60, %v788_v60  ;;  %v1119_v8 = vpack.c.bf16 %v804_v61, %v804_v61  ;;  %v789_v9 = vmax.f32 %v757_v62, 0.0  ;;  %v675_v18 = vpop.f32.mrb[9].mxu1  ;;  %v614_v19 = vpop.f32.mrb[11].mxu0 }
 0x105   : > { %v805_v10 = vmax.f32 %v773_v63, 0.0  ;;  %951 = vst.msk [vmem:[%s1498_s25 + $0x18] sm:$0xf] %vm944_vm1, %v1105_v1  ;;  %967 = vst.msk [vmem:[%s1498_s25 + $0x58] sm:$0xf] %vm944_vm1, %v1121_v3  ;;  %v1106_v14 = vpack.c.bf16 %v791_v4, %v791_v4  ;;  %v620_v16 = vadd.f32 %v1242_v0, %v1459_v2  ;;  %v684_v17 = vadd.f32 %v1258_v12, %v1459_v2  ;;  %v1259_v24 = vpop.f32.mrb[10].mxu1 }
 0x106   : > { %v1122_v15 = vpack.c.bf16 %v807_v5, %v807_v5  ;;  %949 = vst.msk [vmem:[%s1498_s25 + $0x10] sm:$0xf] %vm944_vm1, %v1103_v7  ;;  %965 = vst.msk [vmem:[%s1498_s25 + $0x50] sm:$0xf] %vm944_vm1, %v1119_v8  ;;  %v1104_v20 = vpack.c.bf16 %v789_v9, %v789_v9  ;;  %v612_v22 = vadd.f32 %v1459_v2, %v611_v6  ;;  %v678_v29 = vpop.f32.mrb[11].mxu1 }
 0x107   : > { %v1120_v21 = vpack.c.bf16 %v805_v10, %v805_v10  ;;  %v676_v23 = vadd.f32 %v1459_v2, %v675_v18  ;;  %952 = vst.msk [vmem:[%s1498_s25 + $0x1c] sm:$0xf] %vm944_vm1, %v1106_v14  ;;  %v723_v25 = vmul.f32 %v1464_v11, %v620_v16  ;;  %v739_v26 = vmul.f32 %v1464_v11, %v684_v17 }
 0x108   : > { %968 = vst.msk [vmem:[%s1498_s25 + $0x5c] sm:$0xf] %vm944_vm1, %v1122_v15  ;;  %v623_v27 = vadd.f32 %v1243_v13, %v1459_v2  ;;  %v687_v28 = vadd.f32 %v1259_v24, %v1459_v2  ;;  %950 = vst.msk [vmem:[%s1498_s25 + $0x14] sm:$0xf] %vm944_vm1, %v1104_v20  ;;  %v721_v30 = vmul.f32 %v1464_v11, %v612_v22 }
 0x109   : > { %966 = vst.msk [vmem:[%s1498_s25 + $0x54] sm:$0xf] %vm944_vm1, %v1120_v21  ;;  %v737_v31 = vmul.f32 %v1464_v11, %v676_v23  ;;  %v615_v32 = vadd.f32 %v1459_v2, %v614_v19  ;;  %v679_v33 = vadd.f32 %v1459_v2, %v678_v29  ;;  %v762_v34 = vadd.f32 %v1471_v46, %v723_v25 }
 0x10a   : > { %v778_v35 = vadd.f32 %v1471_v46, %v739_v26  ;;  %v724_v36 = vmul.f32 %v1464_v11, %v623_v27  ;;  %v740_v37 = vmul.f32 %v1464_v11, %v687_v28  ;;  %v760_v38 = vadd.f32 %v1471_v46, %v721_v30  ;;  %v1246_v47 = vpop.f32.mrb[12].mxu0 }
 0x10b   : > { %v776_v39 = vadd.f32 %v1471_v46, %v737_v31  ;;  %v722_v40 = vmul.f32 %v1464_v11, %v615_v32  ;;  %v738_v41 = vmul.f32 %v1464_v11, %v679_v33  ;;  %v794_v42 = vmax.f32 %v762_v34, 0.0  ;;  %v627_v52 = vpop.f32.mrb[13].mxu0 }
 0x10c   : > { %v810_v43 = vmax.f32 %v778_v35, 0.0  ;;  %v763_v44 = vadd.f32 %v1471_v46, %v724_v36  ;;  %v779_v45 = vadd.f32 %v1471_v46, %v740_v37  ;;  %v792_v48 = vmax.f32 %v760_v38, 0.0  ;;  %v1247_v57 = vpop.f32.mrb[14].mxu0 }
 0x10d   : > { %v808_v49 = vmax.f32 %v776_v39, 0.0  ;;  %v761_v50 = vadd.f32 %v1471_v46, %v722_v40  ;;  %v777_v51 = vadd.f32 %v1471_v46, %v738_v41  ;;  %v1109_v53 = vpack.c.bf16 %v794_v42, %v794_v42  ;;  %v1262_v62 = vpop.f32.mrb[12].mxu1  ;;  %v630_v63 = vpop.f32.mrb[15].mxu0 }
 0x10e   : > { %v1125_v54 = vpack.c.bf16 %v810_v43, %v810_v43  ;;  %v795_v55 = vmax.f32 %v763_v44, 0.0  ;;  %v811_v56 = vmax.f32 %v779_v45, 0.0  ;;  %v1107_v58 = vpack.c.bf16 %v792_v48, %v792_v48  ;;  %v691_v5 = vpop.f32.mrb[13].mxu1 }
 0x10f   : > { %v1123_v59 = vpack.c.bf16 %v808_v49, %v808_v49  ;;  %v793_v60 = vmax.f32 %v761_v50, 0.0  ;;  %v809_v61 = vmax.f32 %v777_v51, 0.0  ;;  %955 = vst.msk [vmem:[%s1498_s25 + $0x28] sm:$0xf] %vm944_vm1, %v1109_v53  ;;  %v636_v3 = vadd.f32 %v1246_v47, %v1459_v2  ;;  %v1263_v10 = vpop.f32.mrb[14].mxu1 }
 0x110   : > { %971 = vst.msk [vmem:[%s1498_s25 + $0x68] sm:$0xf] %vm944_vm1, %v1125_v54  ;;  %v1110_v0 = vpack.c.bf16 %v795_v55, %v795_v55  ;;  %v1126_v1 = vpack.c.bf16 %v811_v56, %v811_v56  ;;  %v700_v4 = vadd.f32 %v1262_v62, %v1459_v2  ;;  %953 = vst.msk [vmem:[%s1498_s25 + $0x20] sm:$0xf] %vm944_vm1, %v1107_v58  ;;  %v694_v16 = vpop.f32.mrb[15].mxu1 }
 0x111   : > { %969 = vst.msk [vmem:[%s1498_s25 + $0x60] sm:$0xf] %vm944_vm1, %v1123_v59  ;;  %v1108_v6 = vpack.c.bf16 %v793_v60, %v793_v60  ;;  %v1124_v7 = vpack.c.bf16 %v809_v61, %v809_v61  ;;  %v628_v8 = vadd.f32 %v1459_v2, %v627_v52  ;;  %v692_v9 = vadd.f32 %v1459_v2, %v691_v5 }
 0x112   : > { %956 = vst.msk [vmem:[%s1498_s25 + $0x2c] sm:$0xf] %vm944_vm1, %v1110_v0  ;;  %972 = vst.msk [vmem:[%s1498_s25 + $0x6c] sm:$0xf] %vm944_vm1, %v1126_v1  ;;  %v727_v12 = vmul.f32 %v1464_v11, %v636_v3  ;;  %v743_v13 = vmul.f32 %v1464_v11, %v700_v4  ;;  %v639_v14 = vadd.f32 %v1247_v57, %v1459_v2 }
 0x113   : > { %v703_v15 = vadd.f32 %v1263_v10, %v1459_v2  ;;  %954 = vst.msk [vmem:[%s1498_s25 + $0x24] sm:$0xf] %vm944_vm1, %v1108_v6  ;;  %970 = vst.msk [vmem:[%s1498_s25 + $0x64] sm:$0xf] %vm944_vm1, %v1124_v7  ;;  %v725_v17 = vmul.f32 %v1464_v11, %v628_v8  ;;  %v741_v18 = vmul.f32 %v1464_v11, %v692_v9 }
 0x114   : > { %v631_v19 = vadd.f32 %v1459_v2, %v630_v63  ;;  %v695_v20 = vadd.f32 %v1459_v2, %v694_v16  ;;  %v766_v21 = vadd.f32 %v1471_v46, %v727_v12  ;;  %v782_v22 = vadd.f32 %v1471_v46, %v743_v13 }
 0x115   : > { %v728_v23 = vmul.f32 %v1464_v11, %v639_v14  ;;  %v744_v24 = vmul.f32 %v1464_v11, %v703_v15  ;;  %v764_v25 = vadd.f32 %v1471_v46, %v725_v17  ;;  %v780_v26 = vadd.f32 %v1471_v46, %v741_v18 }
 0x116   : > { %v726_v27 = vmul.f32 %v1464_v11, %v631_v19  ;;  %v742_v28 = vmul.f32 %v1464_v11, %v695_v20  ;;  %v798_v29 = vmax.f32 %v766_v21, 0.0  ;;  %v814_v30 = vmax.f32 %v782_v22, 0.0 }
 0x117   : > { %v767_v2 = vadd.f32 %v1471_v46, %v728_v23  ;;  %v783_v31 = vadd.f32 %v1471_v46, %v744_v24  ;;  %v796_v32 = vmax.f32 %v764_v25, 0.0  ;;  %v812_v33 = vmax.f32 %v780_v26, 0.0 }
 0x118   : > { %v765_v34 = vadd.f32 %v1471_v46, %v726_v27  ;;  %v781_v35 = vadd.f32 %v1471_v46, %v742_v28  ;;  %v1113_v36 = vpack.c.bf16 %v798_v29, %v798_v29  ;;  %v1129_v37 = vpack.c.bf16 %v814_v30, %v814_v30 }
 0x119   : > { %v799_v11 = vmax.f32 %v767_v2, 0.0  ;;  %v815_v38 = vmax.f32 %v783_v31, 0.0  ;;  %v1111_v39 = vpack.c.bf16 %v796_v32, %v796_v32  ;;  %v1127_v40 = vpack.c.bf16 %v812_v33, %v812_v33 }
 0x11a   : > { %v797_v41 = vmax.f32 %v765_v34, 0.0  ;;  %v813_v42 = vmax.f32 %v781_v35, 0.0  ;;  %959 = vst.msk [vmem:[%s1498_s25 + $0x38] sm:$0xf] %vm944_vm1, %v1113_v36  ;;  %975 = vst.msk [vmem:[%s1498_s25 + $0x78] sm:$0xf] %vm944_vm1, %v1129_v37 }
 0x11b   : > { %v1114_v43 = vpack.c.bf16 %v799_v11, %v799_v11  ;;  %v1130_v44 = vpack.c.bf16 %v815_v38, %v815_v38  ;;  %957 = vst.msk [vmem:[%s1498_s25 + $0x30] sm:$0xf] %vm944_vm1, %v1111_v39  ;;  %973 = vst.msk [vmem:[%s1498_s25 + $0x70] sm:$0xf] %vm944_vm1, %v1127_v40 }
 0x11c   : > { %v1112_v46 = vpack.c.bf16 %v797_v41, %v797_v41  ;;  %v1128_v45 = vpack.c.bf16 %v813_v42, %v813_v42 }
 0x11d   : > { %960 = vst.msk [vmem:[%s1498_s25 + $0x3c] sm:$0xf] %vm944_vm1, %v1114_v43  ;;  %976 = vst.msk [vmem:[%s1498_s25 + $0x7c] sm:$0xf] %vm944_vm1, %v1130_v44 }
 0x11e   : > { %958 = vst.msk [vmem:[%s1498_s25 + $0x34] sm:$0xf] %vm944_vm1, %v1112_v46  ;;  %974 = vst.msk [vmem:[%s1498_s25 + $0x74] sm:$0xf] %vm944_vm1, %v1128_v45 }
 0x11f PF: > { %s17_s24 = sadd.s32 1, %s1284_s24  }
 0x120   : > { %p14_p4 = scmp.ge.s32.totalorder %s17_s24, 4  }
 0x122   :  { %16 = sbr.rel (!%p14_p4) target bundleno = 1 (0x1), region = 78 }

// kernel: residual_forward.5
= control target key start
LH: loop header
LB: loop body
LE: loop exit
PB: predicated region body
PF: predicated region fallthrough
CT: control target
= control target key end

     0   :  { %11 = vsyncpa [#allocation3], 0  ;;  %s1916_s0 = inlined_call_operand.vmem [shape: bf16[512,32], index: 0, kind: input, shape index: {}]   ;;  %s1917_s1 = inlined_call_operand.vmem [shape: bf16[32,64], index: 1, kind: input, shape index: {}]   ;;  %s1918_s2 = inlined_call_operand.vmem [shape: f32[1,64], index: 2, kind: input, shape index: {}]   ;;  %s1919_s3 = inlined_call_operand.vmem [shape: bf16[512,32], index: 3, kind: input, shape index: {}]   ;;  %s1920_s4 = inlined_call_operand.vmem [shape: bf16[32,64], index: 4, kind: input, shape index: {}]   ;;  %s1921_s5 = inlined_call_operand.vmem [shape: f32[1,64], index: 5, kind: input, shape index: {}]   ;;  %s1922_s6 = inlined_call_operand.hbm [shape: f32[512,64], index: 6, kind: output, shape index: {}]  }
   0x1   :  { %13 = vsyncpa [#allocation3 + $0x1], 0  ;;  %s1586_s21 = smov 0   ;;  %s1588_s22 = smov 0  }
   0x2   :  { %s1590_s23 = smov 0   ;;  %s1592_s24 = smov 0  }
   0x3 LB: > { %s1607_s25 = sadd.s32 4294967295, %s1546_s24   ;;  %s1150_s26 = sadd.s32 4294967294, %s1546_s24   ;;  %s1546_s24 = sphi %s1592_s24, %s1928_s24   ;;  %s1542_s23 = sphi %s1590_s23, %s1927_s23   ;;  %s1538_s22 = sphi %s1588_s22, %s1926_s22   ;;  %s1534_s21 = sphi %s1586_s21, %s1925_s21  }
   0x4   : > { %s1611_s27 = sadd.s32 1, %s1546_s24   ;;  %s162_s28 = sadd.s32 1, %s1542_s23 }
   0x5   : > { %s159_s29 = ssub.s32 %s1546_s24, %s1611_s27  ;;  %p172_p0 = scmp.ne.s32.totalorder %s1542_s23, %s1538_s22 }
   0x6   : > { %p160_p1 = scmp.eq.s32.totalorder %s159_s29, 0  ;;  %p173_p2 = scmp.eq.s32.totalorder %s1607_s25, 1 }
   0x7   : > { %p178_p3 = scmp.ne.s32.totalorder %s1538_s22, %s1534_s21  ;;  %p179_p4 = scmp.eq.s32.totalorder %s1150_s26, 1 }
   0x8   : > { %s1622_s30 = scalar_select %p160_p1, %s1542_s23, %s162_s28  }
   0x9   : > { %p1624_p5 = por %p173_p2, %p172_p0  ;;  %p1628_p6 = por %p179_p4, %p178_p3 }
   0xa   : > { %p1153_p7 = scmp.ge.s32.totalorder %s1546_s24, 1  ;;  %p227_p8 = scmp.lt.s32.totalorder %s1546_s24, 3 }
   0xc   : > { %p228_p9 = pnand %p1153_p7, %p227_p8 }
   0xd   : > { %v1448_v0 = vld [vmem:[%s1920_s4] sm:$0xff] (!%p228_p9)   ;;  %s1155_s11 = sshll.u32 (!%p228_p9), %s1607_s25, 5  ;;  %v1450_v2 = vld [vmem:[%s1920_s4 + $0x8] sm:$0xff] (!%p228_p9)   ;;  %vm440_vm0 = vcmask (!%p228_p9), 261120   ;;  %s259_s10 = sand.u32 (!%p228_p9), 1, %s1538_s22   ;;  %vm1029_vm1 = vcmask (!%p228_p9), 523264  }
   0xe   : > { %231 = sbr.rel (%p228_p9) target bundleno = 318 (0x13e), region = 44  ;;  %v1449_v1 = vld [vmem:[%s1917_s1] sm:$0xff] (!%p228_p9)   ;;  %p263_p10 = scmp.lt.s32.totalorder (!%p228_p9), %s1155_s11, 63  ;;  %1271 = vmatprep.subr.bf16.mxu1 (!%p228_p9), %v1448_v0  ;;  %v1451_v3 = vld [vmem:[%s1917_s1 + $0x8] sm:$0xff] (!%p228_p9)  }
   0xf   : > { %1307 = vmatprep.subr.bf16.mxu0 (!%p228_p9), %v1449_v1  ;;  %1272 = vmatpush3.bf16.msra.mxu1 (!%p228_p9), %v1448_v0  ;;  %v1725_v37 = vld [vmem:[%s1918_s2] ss:$0 sm:$0xff] (!%p228_p9)  ;;  %s1154_s13 = sshll.u32 (!%p228_p9), %s259_s10, 8  ;;  %s1234_s17 = sshll.u32 (!%p228_p9), %s1607_s25, 12 }
  0x10   : > { %1308 = vmatpush3.bf16.msra.mxu0 (!%p228_p9), %v1449_v1  ;;  %1273 = vmatprep.subr.bf16.mxu1 (!%p228_p9), %v1450_v2  ;;  %v1732_v43 = vld [vmem:[%s1921_s5] ss:$0 sm:$0xff] (!%p228_p9)  ;;  %s1741_s16 = scalar_lea.vmem (!%p228_p9), [#allocation2], %s1154_s13  ;;  %s1875_s25 = scalar_lea.sflag (!%p228_p9), [#allocation3], %s259_s10 }
  0x11   : > { %1309 = vmatprep.subr.bf16.mxu0 (!%p228_p9), %v1451_v3  ;;  %s1548_s29 = smov (!%p228_p9), [#allocation2]  }
  0x13   : > { %1274 = vmatpush3.bf16.msra.mxu1 (!%p228_p9), %v1450_v2 }
  0x14   : > { %1310 = vmatpush3.bf16.msra.mxu0 (!%p228_p9), %v1451_v3 }
  0x15   : > { %s1930_s11 = smov (!%p263_p10, %s1155_s11), 63 }
  0x16   : > { %s1156_s18 = sshll.u32 %s1930_s11, 2 }
  0x17   : > { %s1650_s26 = scalar_lea.vmem %s1919_s3, %s1156_s18  ;;  %s1655_s9 = scalar_lea.vmem %s1916_s0, %s1156_s18 }
  0x18   : > { %v1452_v4 = vld [vmem:[%s1650_s26] sm:$0xff]   ;;  %v1454_v6 = vld [vmem:[%s1650_s26 + $0x8] sm:$0xff]   ;;  %v1456_v8 = vld [vmem:[%s1650_s26 + $0x10] sm:$0xff]   ;;  %s1076_s18 = sshll.u32 %s1741_s16, 4  ;;  %s1864_s18 = int_to_ptr.vmem [resolvable:$true] %s1076_s18 }
  0x19   : > { %v1453_v5 = vld [vmem:[%s1655_s9] sm:$0xff]   ;;  %1275 = vmatprep.mubr.msk.bf16.mxu1 %vm440_vm0, %v1452_v4  ;;  %v1455_v7 = vld [vmem:[%s1655_s9 + $0x8] sm:$0xff]   ;;  %v1457_v9 = vld [vmem:[%s1655_s9 + $0x10] sm:$0xff]   ;;  %s1484_s28 = scalar_lea.vmem %s1864_s18, 4096 }
  0x1a   : > { %1311 = vmatprep.mubr.msk.bf16.mxu0 %vm440_vm0, %v1453_v5  ;;  %1276 = vmatmul.mubr.msk.bf16.vlgmr.msra.gmra.mrb[0].mxu1 %vm440_vm0, %v1454_v6  ;;  %v1458_v10 = vld [vmem:[%s1650_s26 + $0x18] sm:$0xff]   ;;  %v1460_v12 = vld [vmem:[%s1650_s26 + $0x20] sm:$0xff]   ;;  %v1462_v14 = vld [vmem:[%s1650_s26 + $0x28] sm:$0xff]   ;;  %p1485_p11 = scmp.ne.s32.totalorder %s1864_s18, %s1484_s28 }
  0x1b   : > { %1312 = vmatmul.mubr.msk.bf16.vlgmr.msra.gmra.mrb[0].mxu0 %vm440_vm0, %v1455_v7  ;;  %1279 = vmatprep.mubr.msk.bf16.mxu1 %vm440_vm0, %v1456_v8  ;;  %v1459_v11 = vld [vmem:[%s1655_s9 + $0x18] sm:$0xff]   ;;  %v1461_v13 = vld [vmem:[%s1655_s9 + $0x20] sm:$0xff]   ;;  %v1463_v15 = vld [vmem:[%s1655_s9 + $0x28] sm:$0xff]  }
  0x1c   : > { %1315 = vmatprep.mubr.msk.bf16.mxu0 %vm440_vm0, %v1457_v9  ;;  %v1464_v16 = vld [vmem:[%s1650_s26 + $0x30] sm:$0xff]   ;;  %v1466_v18 = vld [vmem:[%s1650_s26 + $0x38] sm:$0xff]   ;;  %v1468_v20 = vld [vmem:[%s1650_s26 + $0x40] sm:$0xff]   ;;  %p1486_p12 = pnand %p1485_p11, %p1624_p5 }
  0x1d   : > { %v1465_v17 = vld [vmem:[%s1655_s9 + $0x30] sm:$0xff]   ;;  %v1467_v19 = vld [vmem:[%s1655_s9 + $0x38] sm:$0xff]   ;;  %v1469_v21 = vld [vmem:[%s1655_s9 + $0x40] sm:$0xff]  }
  0x1e   : > { %v1470_v22 = vld [vmem:[%s1650_s26 + $0x48] sm:$0xff]   ;;  %v1472_v24 = vld [vmem:[%s1650_s26 + $0x50] sm:$0xff]   ;;  %v1474_v26 = vld [vmem:[%s1650_s26 + $0x58] sm:$0xff]   ;;  %p1487_p13 = pneg %p1486_p12 }
  0x1f   : > { %v1471_v23 = vld [vmem:[%s1655_s9 + $0x48] sm:$0xff]   ;;  %v1473_v25 = vld [vmem:[%s1655_s9 + $0x50] sm:$0xff]   ;;  %v1475_v27 = vld [vmem:[%s1655_s9 + $0x58] sm:$0xff]  }
  0x20   : > { %v1476_v28 = vld [vmem:[%s1650_s26 + $0x60] sm:$0xff]   ;;  %v1478_v30 = vld [vmem:[%s1650_s26 + $0x68] sm:$0xff]   ;;  %v1480_v32 = vld [vmem:[%s1650_s26 + $0x70] sm:$0xff]  }
  0x21   : > { %v1477_v29 = vld [vmem:[%s1655_s9 + $0x60] sm:$0xff]   ;;  %v1479_v31 = vld [vmem:[%s1655_s9 + $0x68] sm:$0xff]   ;;  %v1481_v33 = vld [vmem:[%s1655_s9 + $0x70] sm:$0xff]  }
  0x22   : > { %1280 = vmatmul.mubr.msk.bf16.gmra.mrb[4].mxu1 %vm440_vm0, %v1458_v10  ;;  %v1482_v34 = vld [vmem:[%s1650_s26 + $0x78] sm:$0xff]   ;;  %s1862_s26 = scalar_lea.hbm %s1922_s6, %s1234_s17 }
  0x23   : > { %1316 = vmatmul.mubr.msk.bf16.gmra.mrb[4].mxu0 %vm440_vm0, %v1459_v11  ;;  %1283 = vmatprep.mubr.msk.bf16.mxu1 %vm440_vm0, %v1460_v12  ;;  %v1483_v35 = vld [vmem:[%s1655_s9 + $0x78] sm:$0xff]   ;;  %s1488_s9 = sshll.u32 %s1548_s29, 4  ;;  %s1489_s9 = int_to_ptr.vmem [resolvable:$false] %s1488_s9 }
  0x24   : > { %1319 = vmatprep.mubr.msk.bf16.mxu0 %vm440_vm0, %v1461_v13  ;;  %s1490_s11 = scalar_lea.vmem %s1489_s9, 8192  ;;  %p1491_p0 = scmp.lt.s32.totalorder %s1864_s18, %s1489_s9 }
  0x25   : > { %p1492_p1 = scmp.lt.s32.totalorder %s1490_s11, %s1484_s28 }
  0x27   : > { %p1493_p2 = por %p1492_p1, %p1491_p0 }
  0x29   : > { %p1494_p3 = pnand %p1493_p2, %p1487_p13 }
  0x2a   : > { %1284 = vmatmul.mubr.msk.bf16.gmra.mrb[8].mxu1 %vm440_vm0, %v1462_v14 }
  0x2b   : > { %1320 = vmatmul.mubr.msk.bf16.gmra.mrb[8].mxu0 %vm440_vm0, %v1463_v15  ;;  %1287 = vmatprep.mubr.msk.bf16.mxu1 %vm440_vm0, %v1464_v16 }
  0x2c   : > { %1323 = vmatprep.mubr.msk.bf16.mxu0 %vm440_vm0, %v1465_v17 }
  0x32   : > { %1288 = vmatmul.mubr.msk.bf16.gmra.mrb[12].mxu1 %vm440_vm0, %v1466_v18 }
  0x33   : > { %1324 = vmatmul.mubr.msk.bf16.gmra.mrb[12].mxu0 %vm440_vm0, %v1467_v19  ;;  %1291 = vmatprep.mubr.msk.bf16.mxu1 %vm440_vm0, %v1468_v20 }
  0x34   : > { %1327 = vmatprep.mubr.msk.bf16.mxu0 %vm440_vm0, %v1469_v21 }
  0x3a   : > { %1292 = vmatmul.mubr.msk.bf16.gmra.mrb[16].mxu1 %vm440_vm0, %v1470_v22 }
  0x3b   : > { %1328 = vmatmul.mubr.msk.bf16.gmra.mrb[16].mxu0 %vm440_vm0, %v1471_v23  ;;  %1295 = vmatprep.mubr.msk.bf16.mxu1 %vm440_vm0, %v1472_v24 }
  0x3c   : > { %1331 = vmatprep.mubr.msk.bf16.mxu0 %vm440_vm0, %v1473_v25 }
  0x42   : > { %1296 = vmatmul.mubr.msk.bf16.gmra.mrb[20].mxu1 %vm440_vm0, %v1474_v26 }
  0x43   : > { %1332 = vmatmul.mubr.msk.bf16.gmra.mrb[20].mxu0 %vm440_vm0, %v1475_v27  ;;  %1299 = vmatprep.mubr.msk.bf16.mxu1 %vm440_vm0, %v1476_v28 }
  0x44   : > { %1335 = vmatprep.mubr.msk.bf16.mxu0 %vm440_vm0, %v1477_v29 }
  0x4a   : > { %1300 = vmatmul.mubr.msk.bf16.gmra.mrb[24].mxu1 %vm440_vm0, %v1478_v30 }
  0x4b   : > { %1336 = vmatmul.mubr.msk.bf16.gmra.mrb[24].mxu0 %vm440_vm0, %v1479_v31  ;;  %1303 = vmatprep.mubr.msk.bf16.mxu1 %vm440_vm0, %v1480_v32 }
  0x4c   : > { %1339 = vmatprep.mubr.msk.bf16.mxu0 %vm440_vm0, %v1481_v33 }
  0x52   : > { %1304 = vmatmul.mubr.msk.bf16.gmra.mrb[28].mxu1 %vm440_vm0, %v1482_v34 }
  0x53   : > { %1340 = vmatmul.mubr.msk.bf16.gmra.mrb[28].mxu0 %vm440_vm0, %v1483_v35 }
  0xed   : > { %v1277_v36 = vpop.f32.mrb[0].mxu1 }
  0xee   : > { %v1313_v38 = vpop.f32.mrb[0].mxu0  ;;  %v523_v39 = vpop.f32.mrb[1].mxu1 }
  0xef   : > { %v1343_v40 = vadd.f32 %v1313_v38, %v1277_v36  ;;  %v831_v41 = vpop.f32.mrb[1].mxu0  ;;  %v1278_v42 = vpop.f32.mrb[2].mxu1 }
  0xf0   : > { %v1345_v44 = vadd.f32 %v831_v41, %v523_v39  ;;  %v1347_v45 = vadd.f32 %v1278_v42, %v1725_v37  ;;  %v1314_v46 = vpop.f32.mrb[2].mxu0  ;;  %v526_v47 = vpop.f32.mrb[3].mxu1 }
  0xf1   : > { %v1344_v48 = vadd.f32 %v1343_v40, %v1725_v37  ;;  %v1349_v49 = vadd.f32 %v1725_v37, %v526_v47  ;;  %v834_v50 = vpop.f32.mrb[3].mxu0 }
  0xf2   : > { %v1346_v51 = vadd.f32 %v1345_v44, %v1725_v37  ;;  %v1348_v52 = vadd.f32 %v1347_v45, %v1314_v46 }
  0xf3   : > { %v999_v53 = vadd.f32 %v1344_v48, %v1732_v43  ;;  %v1350_v54 = vadd.f32 %v1349_v49, %v834_v50 }
  0xf4   : > { %v997_v55 = vadd.f32 %v1346_v51, %v1732_v43  ;;  %v1000_v56 = vadd.f32 %v1348_v52, %v1732_v43 }
  0xf5   : > { %1032 = vst.msk [vmem:[%s1741_s16 + $0x10] sm:$0xff] %vm1029_vm1, %v999_v53  ;;  %v998_v57 = vadd.f32 %v1350_v54, %v1732_v43  ;;  %v1281_v58 = vpop.f32.mrb[4].mxu1 }
  0xf6   : > { %1030 = vst.msk [vmem:[%s1741_s16] sm:$0xff] %vm1029_vm1, %v997_v55  ;;  %1033 = vst.msk [vmem:[%s1741_s16 + $0x18] sm:$0xff] %vm1029_vm1, %v1000_v56  ;;  %v1351_v59 = vadd.f32 %v1281_v58, %v1725_v37  ;;  %v1317_v60 = vpop.f32.mrb[4].mxu0  ;;  %v539_v61 = vpop.f32.mrb[5].mxu1 }
  0xf7   : > { %1031 = vst.msk [vmem:[%s1741_s16 + $0x8] sm:$0xff] %vm1029_vm1, %v998_v57  ;;  %v1353_v62 = vadd.f32 %v1725_v37, %v539_v61  ;;  %v847_v63 = vpop.f32.mrb[5].mxu0  ;;  %v1282_v0 = vpop.f32.mrb[6].mxu1 }
  0xf8   : > { %v1352_v1 = vadd.f32 %v1351_v59, %v1317_v60  ;;  %v1355_v2 = vadd.f32 %v1282_v0, %v1725_v37  ;;  %v1318_v3 = vpop.f32.mrb[6].mxu0  ;;  %v542_v4 = vpop.f32.mrb[7].mxu1 }
  0xf9   : > { %v1354_v5 = vadd.f32 %v1353_v62, %v847_v63  ;;  %v1357_v6 = vadd.f32 %v1725_v37, %v542_v4  ;;  %v850_v7 = vpop.f32.mrb[7].mxu0 }
  0xfa   : > { %v1003_v8 = vadd.f32 %v1352_v1, %v1732_v43  ;;  %v1356_v9 = vadd.f32 %v1355_v2, %v1318_v3 }
  0xfb   : > { %v1001_v10 = vadd.f32 %v1354_v5, %v1732_v43  ;;  %v1358_v11 = vadd.f32 %v1357_v6, %v850_v7 }
  0xfc   : > { %1036 = vst.msk [vmem:[%s1741_s16 + $0x30] sm:$0xff] %vm1029_vm1, %v1003_v8  ;;  %v1004_v12 = vadd.f32 %v1356_v9, %v1732_v43 }
  0xfd   : > { %1034 = vst.msk [vmem:[%s1741_s16 + $0x20] sm:$0xff] %vm1029_vm1, %v1001_v10  ;;  %v1002_v13 = vadd.f32 %v1358_v11, %v1732_v43  ;;  %v1285_v14 = vpop.f32.mrb[8].mxu1 }
  0xfe   : > { %1037 = vst.msk [vmem:[%s1741_s16 + $0x38] sm:$0xff] %vm1029_vm1, %v1004_v12  ;;  %v1359_v15 = vadd.f32 %v1285_v14, %v1725_v37  ;;  %v1321_v16 = vpop.f32.mrb[8].mxu0  ;;  %v555_v17 = vpop.f32.mrb[9].mxu1 }
  0xff   : > { %1035 = vst.msk [vmem:[%s1741_s16 + $0x28] sm:$0xff] %vm1029_vm1, %v1002_v13  ;;  %v1361_v18 = vadd.f32 %v1725_v37, %v555_v17  ;;  %v863_v19 = vpop.f32.mrb[9].mxu0  ;;  %v1286_v20 = vpop.f32.mrb[10].mxu1 }
 0x100   : > { %v1360_v21 = vadd.f32 %v1359_v15, %v1321_v16  ;;  %v1363_v22 = vadd.f32 %v1286_v20, %v1725_v37  ;;  %v1322_v23 = vpop.f32.mrb[10].mxu0  ;;  %v558_v24 = vpop.f32.mrb[11].mxu1 }
 0x101   : > { %v1362_v25 = vadd.f32 %v1361_v18, %v863_v19  ;;  %v1365_v26 = vadd.f32 %v1725_v37, %v558_v24  ;;  %v866_v27 = vpop.f32.mrb[11].mxu0 }
 0x102   : > { %v1007_v28 = vadd.f32 %v1360_v21, %v1732_v43  ;;  %v1364_v29 = vadd.f32 %v1363_v22, %v1322_v23 }
 0x103   : > { %v1005_v30 = vadd.f32 %v1362_v25, %v1732_v43  ;;  %v1366_v31 = vadd.f32 %v1365_v26, %v866_v27 }
 0x104   : > { %1040 = vst.msk [vmem:[%s1741_s16 + $0x50] sm:$0xff] %vm1029_vm1, %v1007_v28  ;;  %v1008_v32 = vadd.f32 %v1364_v29, %v1732_v43 }
 0x105   : > { %1038 = vst.msk [vmem:[%s1741_s16 + $0x40] sm:$0xff] %vm1029_vm1, %v1005_v30  ;;  %v1006_v33 = vadd.f32 %v1366_v31, %v1732_v43  ;;  %v1289_v34 = vpop.f32.mrb[12].mxu1 }
 0x106   : > { %1041 = vst.msk [vmem:[%s1741_s16 + $0x58] sm:$0xff] %vm1029_vm1, %v1008_v32  ;;  %v1367_v35 = vadd.f32 %v1289_v34, %v1725_v37  ;;  %v1325_v36 = vpop.f32.mrb[12].mxu0  ;;  %v571_v38 = vpop.f32.mrb[13].mxu1 }
 0x107   : > { %1039 = vst.msk [vmem:[%s1741_s16 + $0x48] sm:$0xff] %vm1029_vm1, %v1006_v33  ;;  %v1369_v39 = vadd.f32 %v1725_v37, %v571_v38  ;;  %v879_v40 = vpop.f32.mrb[13].mxu0  ;;  %v1290_v41 = vpop.f32.mrb[14].mxu1 }
 0x108   : > { %v1368_v42 = vadd.f32 %v1367_v35, %v1325_v36  ;;  %v1371_v44 = vadd.f32 %v1290_v41, %v1725_v37  ;;  %v1326_v45 = vpop.f32.mrb[14].mxu0  ;;  %v574_v46 = vpop.f32.mrb[15].mxu1 }
 0x109   : > { %v1370_v47 = vadd.f32 %v1369_v39, %v879_v40  ;;  %v1373_v48 = vadd.f32 %v1725_v37, %v574_v46  ;;  %v882_v49 = vpop.f32.mrb[15].mxu0 }
 0x10a   : > { %v1011_v50 = vadd.f32 %v1368_v42, %v1732_v43  ;;  %v1372_v51 = vadd.f32 %v1371_v44, %v1326_v45 }
 0x10b   : > { %v1009_v52 = vadd.f32 %v1370_v47, %v1732_v43  ;;  %v1374_v53 = vadd.f32 %v1373_v48, %v882_v49 }
 0x10c   : > { %1044 = vst.msk [vmem:[%s1741_s16 + $0x70] sm:$0xff] %vm1029_vm1, %v1011_v50  ;;  %v1012_v54 = vadd.f32 %v1372_v51, %v1732_v43 }
 0x10d   : > { %1042 = vst.msk [vmem:[%s1741_s16 + $0x60] sm:$0xff] %vm1029_vm1, %v1009_v52  ;;  %v1010_v55 = vadd.f32 %v1374_v53, %v1732_v43  ;;  %v1293_v56 = vpop.f32.mrb[16].mxu1 }
 0x10e   : > { %1045 = vst.msk [vmem:[%s1741_s16 + $0x78] sm:$0xff] %vm1029_vm1, %v1012_v54  ;;  %v1375_v57 = vadd.f32 %v1293_v56, %v1725_v37  ;;  %v1329_v58 = vpop.f32.mrb[16].mxu0  ;;  %v587_v59 = vpop.f32.mrb[17].mxu1 }
 0x10f   : > { %1043 = vst.msk [vmem:[%s1741_s16 + $0x68] sm:$0xff] %vm1029_vm1, %v1010_v55  ;;  %v1377_v60 = vadd.f32 %v1725_v37, %v587_v59  ;;  %v895_v61 = vpop.f32.mrb[17].mxu0  ;;  %v1294_v62 = vpop.f32.mrb[18].mxu1 }
 0x110   : > { %v1376_v63 = vadd.f32 %v1375_v57, %v1329_v58  ;;  %v1379_v0 = vadd.f32 %v1294_v62, %v1725_v37  ;;  %v1330_v1 = vpop.f32.mrb[18].mxu0  ;;  %v590_v2 = vpop.f32.mrb[19].mxu1 }
 0x111   : > { %v1378_v3 = vadd.f32 %v1377_v60, %v895_v61  ;;  %v1381_v4 = vadd.f32 %v1725_v37, %v590_v2  ;;  %v898_v5 = vpop.f32.mrb[19].mxu0 }
 0x112   : > { %v1015_v6 = vadd.f32 %v1376_v63, %v1732_v43  ;;  %v1380_v7 = vadd.f32 %v1379_v0, %v1330_v1 }
 0x113   : > { %v1013_v8 = vadd.f32 %v1378_v3, %v1732_v43  ;;  %v1382_v9 = vadd.f32 %v1381_v4, %v898_v5 }
 0x114   : > { %1048 = vst.msk [vmem:[%s1741_s16 + $0x90] sm:$0xff] %vm1029_vm1, %v1015_v6  ;;  %v1016_v10 = vadd.f32 %v1380_v7, %v1732_v43 }
 0x115   : > { %1046 = vst.msk [vmem:[%s1741_s16 + $0x80] sm:$0xff] %vm1029_vm1, %v1013_v8  ;;  %v1014_v11 = vadd.f32 %v1382_v9, %v1732_v43  ;;  %v1297_v12 = vpop.f32.mrb[20].mxu1 }
 0x116   : > { %1049 = vst.msk [vmem:[%s1741_s16 + $0x98] sm:$0xff] %vm1029_vm1, %v1016_v10  ;;  %v1383_v13 = vadd.f32 %v1297_v12, %v1725_v37  ;;  %v1333_v14 = vpop.f32.mrb[20].mxu0  ;;  %v603_v15 = vpop.f32.mrb[21].mxu1 }
 0x117   : > { %1047 = vst.msk [vmem:[%s1741_s16 + $0x88] sm:$0xff] %vm1029_vm1, %v1014_v11  ;;  %v1385_v16 = vadd.f32 %v1725_v37, %v603_v15  ;;  %v911_v17 = vpop.f32.mrb[21].mxu0  ;;  %v1298_v18 = vpop.f32.mrb[22].mxu1 }
 0x118   : > { %v1384_v19 = vadd.f32 %v1383_v13, %v1333_v14  ;;  %v1387_v20 = vadd.f32 %v1298_v18, %v1725_v37  ;;  %v1334_v21 = vpop.f32.mrb[22].mxu0  ;;  %v606_v22 = vpop.f32.mrb[23].mxu1 }
 0x119   : > { %v1386_v23 = vadd.f32 %v1385_v16, %v911_v17  ;;  %v1389_v24 = vadd.f32 %v1725_v37, %v606_v22  ;;  %v914_v25 = vpop.f32.mrb[23].mxu0 }
 0x11a   : > { %v1019_v26 = vadd.f32 %v1384_v19, %v1732_v43  ;;  %v1388_v27 = vadd.f32 %v1387_v20, %v1334_v21 }
 0x11b   : > { %v1017_v28 = vadd.f32 %v1386_v23, %v1732_v43  ;;  %v1390_v29 = vadd.f32 %v1389_v24, %v914_v25 }
 0x11c   : > { %1052 = vst.msk [vmem:[%s1741_s16 + $0xb0] sm:$0xff] %vm1029_vm1, %v1019_v26  ;;  %v1020_v30 = vadd.f32 %v1388_v27, %v1732_v43 }
 0x11d   : > { %1050 = vst.msk [vmem:[%s1741_s16 + $0xa0] sm:$0xff] %vm1029_vm1, %v1017_v28  ;;  %v1018_v31 = vadd.f32 %v1390_v29, %v1732_v43  ;;  %v1301_v32 = vpop.f32.mrb[24].mxu1 }
 0x11e   : > { %1053 = vst.msk [vmem:[%s1741_s16 + $0xb8] sm:$0xff] %vm1029_vm1, %v1020_v30  ;;  %v1391_v33 = vadd.f32 %v1301_v32, %v1725_v37  ;;  %v1337_v34 = vpop.f32.mrb[24].mxu0  ;;  %v619_v35 = vpop.f32.mrb[25].mxu1 }
 0x11f   : > { %1051 = vst.msk [vmem:[%s1741_s16 + $0xa8] sm:$0xff] %vm1029_vm1, %v1018_v31  ;;  %v1393_v36 = vadd.f32 %v1725_v37, %v619_v35  ;;  %v927_v38 = vpop.f32.mrb[25].mxu0  ;;  %v1302_v39 = vpop.f32.mrb[26].mxu1 }
 0x120   : > { %v1392_v40 = vadd.f32 %v1391_v33, %v1337_v34  ;;  %v1395_v41 = vadd.f32 %v1302_v39, %v1725_v37  ;;  %v1338_v42 = vpop.f32.mrb[26].mxu0  ;;  %v622_v44 = vpop.f32.mrb[27].mxu1 }
 0x121   : > { %v1394_v45 = vadd.f32 %v1393_v36, %v927_v38  ;;  %v1397_v46 = vadd.f32 %v1725_v37, %v622_v44  ;;  %v930_v47 = vpop.f32.mrb[27].mxu0 }
 0x122   : > { %v1023_v48 = vadd.f32 %v1392_v40, %v1732_v43  ;;  %v1396_v49 = vadd.f32 %v1395_v41, %v1338_v42 }
 0x123   : > { %v1021_v50 = vadd.f32 %v1394_v45, %v1732_v43  ;;  %v1398_v51 = vadd.f32 %v1397_v46, %v930_v47 }
 0x124   : > { %1056 = vst.msk [vmem:[%s1741_s16 + $0xd0] sm:$0xff] %vm1029_vm1, %v1023_v48  ;;  %v1024_v52 = vadd.f32 %v1396_v49, %v1732_v43 }
 0x125   : > { %1054 = vst.msk [vmem:[%s1741_s16 + $0xc0] sm:$0xff] %vm1029_vm1, %v1021_v50  ;;  %v1022_v53 = vadd.f32 %v1398_v51, %v1732_v43  ;;  %v1305_v54 = vpop.f32.mrb[28].mxu1 }
 0x126   : > { %1057 = vst.msk [vmem:[%s1741_s16 + $0xd8] sm:$0xff] %vm1029_vm1, %v1024_v52  ;;  %v1399_v55 = vadd.f32 %v1305_v54, %v1725_v37  ;;  %v1341_v56 = vpop.f32.mrb[28].mxu0  ;;  %v635_v57 = vpop.f32.mrb[29].mxu1 }
 0x127   : > { %1055 = vst.msk [vmem:[%s1741_s16 + $0xc8] sm:$0xff] %vm1029_vm1, %v1022_v53  ;;  %v1401_v58 = vadd.f32 %v1725_v37, %v635_v57  ;;  %v943_v59 = vpop.f32.mrb[29].mxu0  ;;  %v1306_v60 = vpop.f32.mrb[30].mxu1 }
 0x128   : > { %v1400_v61 = vadd.f32 %v1399_v55, %v1341_v56  ;;  %v1403_v62 = vadd.f32 %v1306_v60, %v1725_v37  ;;  %v1342_v63 = vpop.f32.mrb[30].mxu0  ;;  %v638_v0 = vpop.f32.mrb[31].mxu1 }
 0x129   : > { %v1402_v1 = vadd.f32 %v1401_v58, %v943_v59  ;;  %v1405_v2 = vadd.f32 %v1725_v37, %v638_v0  ;;  %v946_v3 = vpop.f32.mrb[31].mxu0 }
 0x12a   : > { %v1027_v4 = vadd.f32 %v1400_v61, %v1732_v43  ;;  %v1404_v5 = vadd.f32 %v1403_v62, %v1342_v63 }
 0x12b   : > { %v1025_v6 = vadd.f32 %v1402_v1, %v1732_v43  ;;  %v1406_v7 = vadd.f32 %v1405_v2, %v946_v3 }
 0x12c   : > { %1060 = vst.msk [vmem:[%s1741_s16 + $0xf0] sm:$0xff] %vm1029_vm1, %v1027_v4  ;;  %v1028_v8 = vadd.f32 %v1404_v5, %v1732_v43 }
 0x12d   : > { %1058 = vst.msk [vmem:[%s1741_s16 + $0xe0] sm:$0xff] %vm1029_vm1, %v1025_v6  ;;  %v1026_v37 = vadd.f32 %v1406_v7, %v1732_v43 }
 0x12e   : > { %1061 = vst.msk [vmem:[%s1741_s16 + $0xf8] sm:$0xff] %vm1029_vm1, %v1028_v8 }
 0x12f   : > { %1059 = vst.msk [vmem:[%s1741_s16 + $0xe8] sm:$0xff] %vm1029_vm1, %v1026_v37 }
 0x130   : > { %1497 = shalt.err (!%p1494_p3)
}
 0x131   : > { %s1498_s10 = scalar_lea.hbm %s1862_s26, 4096  ;;  %s1502_s14 = scalar_lea.hbm %s1922_s6, 8192 }
 0x132   : > { %p1499_p4 = scmp.ne.s32.totalorder %s1862_s26, %s1498_s10  ;;  %p1503_p9 = scmp.lt.u32.totalorder %s1862_s26, %s1922_s6 }
 0x133   : > { %p1504_p10 = scmp.lt.u32.totalorder %s1502_s14, %s1498_s10  ;;  %p1506_p12 = scmp.lt.u32.totalorder %s1498_s10, %s1862_s26 }
 0x134   : > { %p1500_p7 = pnand %p1499_p4, %p1624_p5 }
 0x135   : > { %p1505_p11 = por %p1504_p10, %p1503_p9 }
 0x136   : > { %p1501_p8 = pneg %p1500_p7 }
 0x137   : > { %p1507_p13 = por %p1506_p12, %p1505_p11 }
 0x139   : > { %p1508_p0 = pnand %p1507_p13, %p1501_p8 }
 0x13b   : > { %1511 = shalt.err (!%p1508_p0)
}
 0x13c   : > { %s1549_s17 = smov 128   ;;  %s1550_s19 = smov 8  }
 0x13d   : > { %1407 = dma.vmem_to_hbm [thread:$0]  (%p1624_p5), %s1864_s18, 4096, %s1862_s26, %s1875_s25, %s1549_s17, %s1549_s17, %s1550_s19  }
 0x13e PF: > { %p1413_p1 = scmp.ge.s32.totalorder %s1546_s24, 2  ;;  %s1091_s20 = sand.u32 1, %s1534_s21  }
 0x13f   : > { %s1092_s28 = scalar_lea.sflag [#allocation3], %s1091_s20 }
 0x140   : > { %p1410_p2 = pnand %p1413_p1, %p1628_p6 }
 0x142   : > { %1529 = dma.done.wait (!%p1410_p2), %s1092_s28, 4096  }
 0x143   : > { %1531 = vsyncadd (!%p1410_p2), %s1092_s28, 4294963200  ;;  %p16_p3 = scmp.ge.s32.totalorder %s1611_s27, 4   ;;  %s1925_s21 = smov %s1538_s22 }
 0x144   : > { %s1926_s22 = smov %s1542_s23  ;;  %s1927_s23 = smov %s1622_s30 }
 0x145   : > { %s1928_s24 = smov %s1611_s27  ;;  %18 = sbr.rel (!%p16_p3) target bundleno = 3 (0x3), region = 82 }
 0x14c   :  { %1097 = vsyncpa [#allocation3], 1 }
 0x14d   :  { %1099 = vsyncpa [#allocation3 + $0x1], 1 }

// kernel: residual_forward.4
= control target key start
LH: loop header
LB: loop body
LE: loop exit
PB: predicated region body
PF: predicated region fallthrough
CT: control target
= control target key end

     0   :  { %s2975_s18 = smov 0   ;;  %s2977_s19 = smov 0   ;;  %s3695_s0 = inlined_call_operand.vmem [shape: bf16[2,2,10,18,32], index: 0, kind: input, shape index: {}]   ;;  %s3696_s1 = inlined_call_operand.vmem [shape: bf16[3,3,32,32], index: 1, kind: input, shape index: {}]   ;;  %s3697_s2 = inlined_call_operand.vmem [shape: f32[1,32], index: 2, kind: input, shape index: {}]   ;;  %s3698_s3 = inlined_call_operand.vmem [shape: f32[1,32], index: 3, kind: input, shape index: {}]   ;;  %s3699_s4 = inlined_call_operand.vmem [shape: f32[1,32], index: 4, kind: input, shape index: {}]   ;;  %s3700_s5 = inlined_call_operand.vmem [shape: bf16[2,16,16,32], index: 5, kind: output, shape index: {}]  }
   0x1   :  { %s2979_s20 = smov 0   ;;  %s2981_s21 = smov 0  }
   0x2   :  { %s2983_s22 = smov 0  }
   0x3 LB: > { %s24_s23 = sadd.s32 1, %s2935_s20  ;;  %s27_s24 = sadd.s32 1, %s2939_s21  ;;  %s2943_s22 = sphi %s2983_s22, %s15_s22   ;;  %s2939_s21 = sphi %s2981_s21, %s3708_s21   ;;  %s2935_s20 = sphi %s2979_s20, %s3707_s20   ;;  %s2931_s19 = sphi %s2977_s19, %s3706_s19   ;;  %s2927_s18 = sphi %s2975_s18, %s3705_s18  }
   0x4   : > { %p25_p0 = scmp.ge.s32.totalorder %s24_s23, 2  ;;  %p2228_p1 = scmp.ge.s32.totalorder %s2943_s22, 1 }
   0x5   : > { %p207_p2 = scmp.lt.s32.totalorder %s2943_s22, 5 }
   0x6   : > { %s3710_s23 = smov (%p25_p0, %s24_s23), 0  ;;  %s3712_s24 = smov (!%p25_p0, %s27_s24), %s2939_s21 }
   0x7   : > { %p208_p3 = pnand %p2228_p1, %p207_p2  ;;  %p29_p4 = scmp.ge.s32.totalorder %s3712_s24, 2 }
   0x8   : > { %v2877_v0 = vld [vmem:[%s3696_s1 + $0x10] sm:$0xff] (!%p208_p3)   ;;  %p244_p5 = scmp.lt.s32.totalorder (!%p208_p3), %s2931_s19, 1  ;;  %v3013_v1 = vld [vmem:[%s3696_s1 + $0x40] sm:$0xff] (!%p208_p3)   ;;  %p246_p6 = scmp.lt.s32.totalorder (!%p208_p3), %s2927_s18, 1  ;;  %v2879_v2 = vld [vmem:[%s3696_s1 + $0x18] sm:$0xff] (!%p208_p3)   ;;  %vm535_vm3 = vcmask (!%p208_p3), 261120  }
   0x9   : > { %s3714_s24 = smov (%p29_p4, %s3712_s24), 0  ;;  %211 = sbr.rel (%p208_p3) target bundleno = 411 (0x19b), region = 40 }
   0xa   : > { %2523 = vmatprep.subr.bf16.mxu1 (!%p208_p3), %v2877_v0  ;;  %2603 = vmatprep.subr.bf16.mxu0 (!%p208_p3), %v3013_v1  ;;  %v3025_v3 = vld [vmem:[%s3696_s1 + $0x48] sm:$0xff] (!%p208_p3)   ;;  %v3034_v4 = vld [vmem:[%s3696_s1] sm:$0xff] (!%p208_p3)   ;;  %v3039_v5 = vld [vmem:[%s3696_s1 + $0x50] sm:$0xff] (!%p208_p3)   ;;  %vm299_vm0 = vsmask.f32 (!%p208_p3), 3328  ;;  %vm838_vm4 = vcmask (!%p208_p3), 1042432  }
   0xb   : > { %2524 = vmatpush3.bf16.msra.mxu1 (!%p208_p3), %v2877_v0  ;;  %2604 = vmatpush3.bf16.msra.mxu0 (!%p208_p3), %v3013_v1  ;;  %vm300_vm1 = vsmask.f32 (!%p208_p3), 7440  ;;  %vm839_vm5 = vcmask (!%p208_p3), 1046532   ;;  %vm2108_vm7 = vcmask (!%p208_p3), 257024  }
   0xc   : > { %2525 = vmatprep.subr.bf16.mxu1 (!%p208_p3), %v2879_v2  ;;  %2605 = vmatprep.subr.bf16.mxu0 (!%p208_p3), %v3025_v3  ;;  %vm3082_vm2 = vmor (!%p208_p3), %vm299_vm0, %vm300_vm1 }
   0xd   : > { %vm3165_vm6 = vmor (!%p208_p3), %vm838_vm4, %vm839_vm5 }
   0xf   : > { %2526 = vmatpush3.bf16.msra.mxu1 (!%p208_p3), %v2879_v2  ;;  %2606 = vmatpush3.bf16.msra.mxu0 (!%p208_p3), %v3025_v3 }
  0x10   : > { %s3716_s19 = smov (!%p244_p5, %s2931_s19), 1  ;;  %2543 = vmatprep.subr.bf16.mxu1 %v3034_v4  ;;  %2623 = vmatprep.subr.bf16.mxu0 %v3039_v5 }
  0x11   : > { %s247_s8 = scalar_select %p246_p6, %s2927_s18, 1 }
  0x12   : > { %s2836_s9 = smul.u32 60, %s3716_s19  ;;  %s2232_s12 = sshll.u32 %s3716_s19, 5 }
  0x13   : > { %s2835_s10 = smul.u32 30, %s247_s8  ;;  %s2230_s8 = sshll.u32 %s2927_s18, 3 }
  0x14   : > { %p256_p7 = scmp.lt.s32.totalorder %s2230_s8, 15 }
  0x15   : > { %s250_s13 = sadd.s32 %s2836_s9, %s2835_s10 }
  0x16   : > { %s2229_s16 = sshll.u32 %s250_s13, 2  ;;  %s3718_s8 = smov (!%p256_p7, %s2230_s8), 15 }
  0x17   : > { %s3046_s26 = scalar_lea.vmem %s3695_s0, %s2229_s16  ;;  %s2231_s11 = sshll.u32 %s3718_s8, 1 }
  0x18   : > { %v3050_v6 = vld [vmem:[%s3046_s26] sm:$0xf]  ;;  %v3053_v7 = vld [vmem:[%s3046_s26 + $0x4] sm:$0xf]  ;;  %v3056_v8 = vld [vmem:[%s3046_s26 + $0x8] sm:$0x1]  ;;  %s260_s18 = sadd.s32 %s2232_s12, %s2231_s11 }
  0x19   : > { %v303_v9 = vshrl.u32 %v3050_v6, 16  ;;  %v306_v10 = vshll.u32 %v3050_v6, 16  ;;  %v312_v11 = vshll.u32 %v3053_v7, 16  ;;  %v316_v12 = vshrl.u32 %v3053_v7, 16  ;;  %v3063_v13 = vld [vmem:[%s3046_s26 + $0xc] sm:$0xf] }
  0x1a   : > { %v322_v14 = vshll.u32 %v3056_v8, 16  ;;  %v3067_v15 = vld [vmem:[%s3046_s26 + $0x10] sm:$0xf]  ;;  %v3070_v16 = vld [vmem:[%s3046_s26 + $0x14] sm:$0x1]  ;;  %v327_v22 = vshrl.u32 %v3063_v13, 16 }
  0x1b   : > { %v305_v17 = vrot.slane %v303_v9, 4  ;;  %v308_v18 = vrot.slane %v306_v10, 5  ;;  %v314_v19 = vrot.slane %v312_v11, 5  ;;  %v318_v20 = vrot.slane %v316_v12, 4  ;;  %v3078_v29 = vld [vmem:[%s3046_s26 + $0x18] sm:$0xf] }
  0x1c   : > { %v324_v21 = vrot.slane %v322_v14, 5  ;;  %v330_v23 = vshll.u32 %v3063_v13, 16  ;;  %v336_v24 = vshll.u32 %v3067_v15, 16  ;;  %v340_v27 = vshrl.u32 %v3067_v15, 16  ;;  %v3087_v34 = vld [vmem:[%s3046_s26 + $0x1c] sm:$0xf] }
  0x1d   : > { %v309_v25 = vor.u32 %v308_v18, %v305_v17  ;;  %v319_v26 = vor.u32 %v318_v20, %v314_v19  ;;  %v346_v28 = vshll.u32 %v3070_v16, 16  ;;  %v329_v31 = vrot.slane %v327_v22, 4  ;;  %v3091_v41 = vld [vmem:[%s3046_s26 + $0x20] sm:$0x1]  ;;  %v3101_v48 = vld [vmem:[%s3046_s26 + $0x24] sm:$0xf] }
  0x1e   : > { %v332_v32 = vrot.slane %v330_v23, 5  ;;  %v338_v33 = vrot.slane %v336_v24, 5  ;;  %v342_v37 = vrot.slane %v340_v27, 4  ;;  %v853_v40 = vrot.slane %v3070_v16, 5  ;;  %v3106_v57 = vld [vmem:[%s3046_s26 + $0x28] sm:$0xf] }
  0x1f   : > { %v310_v35 = vrot.slane %v309_v25, 4  ;;  %v320_v36 = vrot.slane %v319_v26, 4  ;;  %v348_v38 = vrot.slane %v346_v28, 5  ;;  %v351_v42 = vshrl.u32 %v3078_v29, 16  ;;  %v3114_v62 = vld [vmem:[%s3046_s26 + $0x2c] sm:$0x1] }
  0x20   : > { %v333_v39 = vor.u32 %v332_v32, %v329_v31  ;;  %v354_v43 = vshll.u32 %v3078_v29, 16  ;;  %v343_v46 = vor.u32 %v342_v37, %v338_v33  ;;  %v360_v47 = vshll.u32 %v3087_v34, 16  ;;  %v3120_v10 = vld [vmem:[%s3046_s26 + $0x30] sm:$0xf]  ;;  %v2885_v18 = vld [vmem:[%s3696_s1 + $0x8] sm:$0xff]   ;;  %s2233_s19 = sshll.u32 %s260_s18, 2 }
  0x21   : > { %v315_v44 = vsel %vm3082_vm2, %v310_v35, %v314_v19  ;;  %v325_v45 = vsel %vm3082_vm2, %v320_v36, %v324_v21  ;;  %v353_v51 = vrot.slane %v351_v42, 4  ;;  %v364_v55 = vshrl.u32 %v3087_v34, 16  ;;  %v3130_v23 = vld [vmem:[%s3046_s26 + $0x34] sm:$0xf]  ;;  %v3137_v27 = vld [vmem:[%s3046_s26 + $0x38] sm:$0x1] }
  0x22   : > { %v2238_v49 = vcombine.low %v315_v44, %v325_v45  ;;  %v334_v50 = vrot.slane %v333_v39, 4  ;;  %v356_v52 = vrot.slane %v354_v43, 5  ;;  %v344_v53 = vrot.slane %v343_v46, 4  ;;  %v3143_v36 = vld [vmem:[%s3046_s26 + $0x3c] sm:$0xf] }
  0x23   : > { %v362_v54 = vrot.slane %v360_v47, 5  ;;  %v370_v56 = vshll.u32 %v3091_v41, 16  ;;  %v857_v60 = vrot.slane %v3087_v34, 5  ;;  %v860_v61 = vrot.slane %v3091_v41, 5  ;;  %v3148_v43 = vld [vmem:[%s3046_s26 + $0x40] sm:$0xf] }
  0x24   : > { %2527 = vmatprep.mubr.msk.bf16.mxu1 %vm535_vm3, %v2238_v49  ;;  %v339_v58 = vsel %vm3082_vm2, %v334_v50, %v338_v33  ;;  %v357_v59 = vor.u32 %v356_v52, %v353_v51  ;;  %v349_v63 = vsel %vm3082_vm2, %v344_v53, %v348_v38  ;;  %v366_v0 = vrot.slane %v364_v55, 4  ;;  %v2884_v51 = vld [vmem:[%s3696_s1 + $0x58] sm:$0xff]  }
  0x25   : > { %v372_v2 = vrot.slane %v370_v56, 5  ;;  %v375_v9 = vshrl.u32 %v3101_v48, 16  ;;  %v2239_v11 = vcombine.low %v339_v58, %v349_v63  ;;  %v378_v14 = vshll.u32 %v3101_v48, 16  ;;  %v3253_v41 = vld [vmem:[%s3046_s26 + $0x58] sm:$0xf] }
  0x26   : > { %v358_v12 = vrot.slane %v357_v59, 4  ;;  %v384_v17 = vshll.u32 %v3106_v57, 16  ;;  %v367_v19 = vor.u32 %v366_v0, %v362_v54  ;;  %v388_v21 = vshrl.u32 %v3106_v57, 16 }
  0x27   : > { %v377_v20 = vrot.slane %v375_v9, 4  ;;  %v394_v22 = vshll.u32 %v3114_v62, 16  ;;  %2607 = vmatprep.mubr.msk.bf16.mxu0 %vm535_vm3, %v2239_v11  ;;  %2528 = vmatmul.mubr.msk.bf16.vlgmr.msra.gmra.mrb[0].mxu1 %vm535_vm3, %v2239_v11  ;;  %v380_v25 = vrot.slane %v378_v14, 5  ;;  %v399_v28 = vshrl.u32 %v3120_v10, 16  ;;  %v3178_v9 = vld [vmem:[%s3046_s26 + $0x44] sm:$0x1] }
  0x28   : > { %v363_v24 = vsel %vm3082_vm2, %v358_v12, %v362_v54  ;;  %v386_v26 = vrot.slane %v384_v17, 5  ;;  %2544 = vmatpush3.bf16.msra.mxu1 %v3034_v4  ;;  %v368_v31 = vrot.slane %v367_v19, 4  ;;  %v390_v32 = vrot.slane %v388_v21, 4  ;;  %v3153_v4 = vld [vmem:[%s3696_s1 + $0x20] sm:$0xff]  }
  0x29   : > { %v396_v33 = vrot.slane %v394_v22, 5  ;;  %v402_v35 = vshll.u32 %v3120_v10, 16  ;;  %v381_v37 = vor.u32 %v380_v25, %v377_v20  ;;  %v401_v38 = vrot.slane %v399_v28, 4  ;;  %2545 = vmatprep.subr.bf16.mxu1 %v2885_v18  ;;  %v3187_v17 = vld [vmem:[%s3696_s1 + $0x60] sm:$0xff]   ;;  %v3192_v20 = vld [vmem:[%s3046_s26 + $0x48] sm:$0xf] }
  0x2a   : > { %v408_v39 = vshll.u32 %v3130_v23, 16  ;;  %v412_v42 = vshrl.u32 %v3130_v23, 16  ;;  %v373_v44 = vsel %vm3082_vm2, %v368_v31, %v372_v2  ;;  %v391_v45 = vor.u32 %v390_v32, %v386_v26  ;;  %v3200_v25 = vld [vmem:[%s3046_s26 + $0x4c] sm:$0xf] }
  0x2b   : > { %v404_v46 = vrot.slane %v402_v35, 5  ;;  %v418_v47 = vshll.u32 %v3137_v27, 16  ;;  %v3158_v49 = vcombine.low %v363_v24, %v373_v44  ;;  %v382_v50 = vrot.slane %v381_v37, 4 }
  0x2c   : > { %v410_v52 = vrot.slane %v408_v39, 5  ;;  %v414_v53 = vrot.slane %v412_v42, 4  ;;  %v392_v54 = vrot.slane %v391_v45, 4  ;;  %v2275_v59 = vrot.slane %v3063_v13, 9  ;;  %2546 = vmatpush3.bf16.msra.mxu1 %v2885_v18 }
  0x2d   : > { %v405_v55 = vor.u32 %v404_v46, %v401_v38  ;;  %v420_v56 = vrot.slane %v418_v47, 5  ;;  %2608 = vmatmul.mubr.msk.bf16.vlgmr.msra.gmra.mrb[0].mxu0 %vm535_vm3, %v3158_v49  ;;  %2531 = vmatprep.mubr.msk.bf16.mxu1 %vm535_vm3, %v3158_v49  ;;  %v387_v63 = vsel %vm3082_vm2, %v382_v50, %v386_v26  ;;  %v850_v2 = vrot.slane %v3067_v15, 5 }
  0x2e   : > { %v415_v0 = vor.u32 %v414_v53, %v410_v52  ;;  %v423_v11 = vshrl.u32 %v3143_v36, 16  ;;  %2624 = vmatpush3.bf16.msra.mxu0 %v3039_v5  ;;  %v397_v12 = vsel %vm3082_vm2, %v392_v54, %v396_v33  ;;  %v426_v18 = vshll.u32 %v3143_v36, 16  ;;  %2563 = vmatprep.subr.bf16.mxu1 %v3153_v4 }
  0x2f   : > { %v406_v14 = vrot.slane %v405_v55, 4  ;;  %v432_v19 = vshll.u32 %v3148_v43, 16  ;;  %v3195_v21 = vcombine.low %v387_v63, %v397_v12  ;;  %2625 = vmatprep.subr.bf16.mxu0 %v2884_v51  ;;  %v851_v22 = vsel %vm3165_vm6, %v2275_v59, %v850_v2 }
  0x30   : > { %v416_v5 = vrot.slane %v415_v0, 4  ;;  %v852_v24 = vrot.slane %v850_v2, 4  ;;  %v425_v28 = vrot.slane %v423_v11, 4  ;;  %v428_v31 = vrot.slane %v426_v18, 5  ;;  %v3244_v0 = vld [vmem:[%s3046_s26 + $0x54] sm:$0xf] }
  0x31   : > { %v411_v26 = vsel %vm3082_vm2, %v406_v14, %v410_v52  ;;  %v434_v32 = vrot.slane %v432_v19, 5  ;;  %2611 = vmatprep.mubr.msk.bf16.mxu0 %vm535_vm3, %v3195_v21  ;;  %2532 = vmatmul.mubr.msk.bf16.gmra.mrb[4].mxu1 %vm535_vm3, %v3195_v21  ;;  %v436_v37 = vshrl.u32 %v3148_v43, 16  ;;  %v442_v38 = vshll.u32 %v3178_v9, 16  ;;  %v3232_v52 = vld [vmem:[%s3046_s26 + $0x50] sm:$0x1] }
  0x32   : > { %v421_v33 = vsel %vm3082_vm2, %v416_v5, %v420_v56  ;;  %v854_v35 = vsel %vm3165_vm6, %v852_v24, %v853_v40  ;;  %2626 = vmatpush3.bf16.msra.mxu0 %v2884_v51  ;;  %v429_v44 = vor.u32 %v428_v31, %v425_v28  ;;  %v2276_v45 = vrot.slane %v3078_v29, 9 }
  0x33   : > { %v3216_v39 = vcombine.low %v411_v26, %v421_v33  ;;  %v3218_v42 = vcombine.low %v851_v22, %v854_v35  ;;  %2643 = vmatprep.subr.bf16.mxu0 %v3187_v17  ;;  %v438_v16 = vrot.slane %v436_v37, 4  ;;  %v444_v46 = vrot.slane %v442_v38, 5  ;;  %v3263_v33 = vld [vmem:[%s3046_s26 + $0x5c] sm:$0x1] }
  0x34   : > { %v859_v40 = vrot.slane %v857_v60, 4  ;;  %v447_v47 = vshrl.u32 %v3192_v20, 16  ;;  %v430_v50 = vrot.slane %v429_v44, 4  ;;  %v858_v51 = vsel %vm3165_vm6, %v2276_v45, %v857_v60 }
  0x35   : > { %2535 = vmatprep.mubr.msk.bf16.mxu1 %vm535_vm3, %v3216_v39  ;;  %v450_v53 = vshll.u32 %v3192_v20, 16  ;;  %v456_v54 = vshll.u32 %v3200_v25, 16  ;;  %2612 = vmatmul.mubr.msk.bf16.gmra.mrb[4].mxu0 %vm535_vm3, %v3216_v39  ;;  %v439_v55 = vor.u32 %v438_v16, %v434_v32  ;;  %v460_v63 = vshrl.u32 %v3200_v25, 16 }
  0x36   : > { %v861_v56 = vsel %vm3165_vm6, %v859_v40, %v860_v61  ;;  %v449_v59 = vrot.slane %v447_v47, 4  ;;  %2627 = vmatprep.mubr.msk.bf16.mxu0 %vm535_vm3, %v3218_v42  ;;  %v435_v60 = vsel %vm3082_vm2, %v430_v50, %v434_v32  ;;  %v466_v18 = vshll.u32 %v3232_v52, 16 }
  0x37   : > { %v3250_v2 = vcombine.low %v858_v51, %v861_v56  ;;  %v452_v11 = vrot.slane %v450_v53, 5  ;;  %v458_v12 = vrot.slane %v456_v54, 5  ;;  %v440_v14 = vrot.slane %v439_v55, 4 }
  0x38   : > { %v462_v61 = vrot.slane %v460_v63, 4  ;;  %v2277_v19 = vrot.slane %v3101_v48, 9  ;;  %v864_v22 = vrot.slane %v3106_v57, 5  ;;  %v867_v24 = vrot.slane %v3114_v62, 5 }
  0x39   : > { %v453_v5 = vor.u32 %v452_v11, %v449_v59  ;;  %v471_v26 = vshrl.u32 %v3244_v0, 16  ;;  %v445_v28 = vsel %vm3082_vm2, %v440_v14, %v444_v46  ;;  %v468_v32 = vrot.slane %v466_v18, 5  ;;  %v2889_v46 = vld [vmem:[%s3696_s1 + $0x68] sm:$0xff]  }
  0x3a   : > { %v463_v31 = vor.u32 %v462_v61, %v458_v12  ;;  %v474_v35 = vshll.u32 %v3244_v0, 16  ;;  %v3266_v37 = vcombine.low %v435_v60, %v445_v28  ;;  %v865_v44 = vsel %vm3165_vm6, %v2277_v19, %v864_v22 }
  0x3b   : > { %v454_v38 = vrot.slane %v453_v5, 4  ;;  %v866_v45 = vrot.slane %v864_v22, 4  ;;  %v473_v62 = vrot.slane %v471_v26, 4  ;;  %v480_v47 = vshll.u32 %v3253_v41, 16 }
  0x3c   : > { %v464_v16 = vrot.slane %v463_v31, 4  ;;  %v476_v40 = vrot.slane %v474_v35, 5  ;;  %2536 = vmatmul.mubr.msk.bf16.gmra.mrb[8].mxu1 %vm535_vm3, %v3266_v37  ;;  %v484_v53 = vshrl.u32 %v3253_v41, 16  ;;  %v490_v54 = vshll.u32 %v3263_v33, 16 }
  0x3d   : > { %v459_v50 = vsel %vm3082_vm2, %v454_v38, %v458_v12  ;;  %v868_v51 = vsel %vm3165_vm6, %v866_v45, %v867_v24  ;;  %2628 = vmatmul.mubr.msk.bf16.vlgmr.msra.gmra.mrb[0].mxu0 %vm535_vm3, %v3250_v2  ;;  %v482_v63 = vrot.slane %v480_v47, 5  ;;  %v2278_v12 = vrot.slane %v3120_v10, 9 }
  0x3e   : > { %v469_v55 = vsel %vm3082_vm2, %v464_v16, %v468_v32  ;;  %v3286_v56 = vcombine.low %v865_v44, %v868_v51  ;;  %v477_v59 = vor.u32 %v476_v40, %v473_v62  ;;  %2644 = vmatpush3.bf16.msra.mxu0 %v3187_v17  ;;  %v486_v11 = vrot.slane %v484_v53, 4  ;;  %v3300_v17 = vld [vmem:[%s3696_s1 + $0x70] sm:$0xff]   ;;  %v3328_v53 = vld [vmem:[%s3046_s26 + $0x64] sm:$0xf] }
  0x3f   : > { %v3289_v60 = vcombine.low %v459_v50, %v469_v55  ;;  %v871_v61 = vrot.slane %v3130_v23, 5  ;;  %v874_v18 = vrot.slane %v3137_v27, 5  ;;  %v2279_v19 = vrot.slane %v3143_v36, 9  ;;  %2645 = vmatprep.subr.bf16.mxu0 %v2889_v46 }
  0x40   : > { %2631 = vmatprep.mubr.msk.bf16.mxu0 %vm535_vm3, %v3286_v56  ;;  %v478_v14 = vrot.slane %v477_v59, 4  ;;  %v487_v5 = vor.u32 %v486_v11, %v482_v63  ;;  %v492_v22 = vrot.slane %v490_v54, 5  ;;  %v878_v24 = vrot.slane %v3148_v43, 5 }
  0x41   : > { %2539 = vmatprep.mubr.msk.bf16.mxu1 %vm535_vm3, %v3289_v60  ;;  %v881_v26 = vrot.slane %v3178_v9, 5  ;;  %v872_v27 = vsel %vm3165_vm6, %v2278_v12, %v871_v61  ;;  %v873_v28 = vrot.slane %v871_v61, 4  ;;  %v2256_v31 = vcombine.low %v3050_v6, %v3053_v7  ;;  %v3350_v61 = vld [vmem:[%s3046_s26 + $0x68] sm:$0x1] }
  0x42   : > { %v885_v32 = vrot.slane %v3200_v25, 5  ;;  %v483_v35 = vsel %vm3082_vm2, %v478_v14, %v482_v63  ;;  %v488_v38 = vrot.slane %v487_v5, 4  ;;  %v879_v44 = vsel %vm3165_vm6, %v2279_v19, %v878_v24  ;;  %2646 = vmatpush3.bf16.msra.mxu0 %v2889_v46  ;;  %v3339_v63 = vld [vmem:[%s3046_s26 + $0x60] sm:$0xf] }
  0x43   : > { %v880_v45 = vrot.slane %v878_v24, 4  ;;  %v875_v9 = vsel %vm3165_vm6, %v873_v28, %v874_v18  ;;  %v2280_v16 = vrot.slane %v3192_v20, 9  ;;  %v888_v40 = vrot.slane %v3232_v52, 5  ;;  %2663 = vmatprep.subr.bf16.mxu0 %v3300_v17 }
  0x44   : > { %v887_v62 = vrot.slane %v885_v32, 4  ;;  %v493_v47 = vsel %vm3082_vm2, %v488_v38, %v492_v22  ;;  %v3322_v50 = vcombine.low %v872_v27, %v875_v9  ;;  %v2281_v51 = vrot.slane %v3244_v0, 9  ;;  %v3375_v38 = vld [vmem:[%s3046_s26 + $0x70] sm:$0xf] }
  0x45   : > { %v882_v46 = vsel %vm3165_vm6, %v880_v45, %v881_v26  ;;  %v3330_v54 = vcombine.low %v483_v35, %v493_v47  ;;  %v892_v52 = vrot.slane %v3253_v41, 5  ;;  %v895_v59 = vrot.slane %v3263_v33, 5 }
  0x46   : > { %v3332_v55 = vcombine.low %v879_v44, %v882_v46  ;;  %2632 = vmatmul.mubr.msk.bf16.gmra.mrb[4].mxu0 %vm535_vm3, %v3322_v50  ;;  %v886_v11 = vsel %vm3165_vm6, %v2280_v16, %v885_v32  ;;  %v889_v12 = vsel %vm3165_vm6, %v887_v62, %v888_v40  ;;  %v1376_v33 = vrot.slane %v3328_v53, 5  ;;  %v2893_v16 = vld [vmem:[%s3696_s1 + $0x28] sm:$0xff]   ;;  %v294_v62 = vld [vmem:[%s3046_s26 + $0x74] sm:$0x1] }
  0x47   : > { %2540 = vmatmul.mubr.msk.bf16.gmra.mrb[12].mxu1 %vm535_vm3, %v3330_v54  ;;  %v894_v14 = vrot.slane %v892_v52, 4  ;;  %v893_v18 = vsel %vm3165_vm6, %v2281_v51, %v892_v52  ;;  %v846_v19 = vrot.slane %v3056_v8, 5  ;;  %v2334_v22 = vrot.slane %v3339_v63, 9 }
  0x48   : > { %2635 = vmatprep.mubr.msk.bf16.mxu0 %vm535_vm3, %v3332_v55  ;;  %2547 = vmatprep.mubr.msk.bf16.mxu1 %vm535_vm3, %v2256_v31  ;;  %v2274_v24 = vrot.slane %v3050_v6, 9  ;;  %v3361_v26 = vcombine.low %v886_v11, %v889_v12  ;;  %v1378_v27 = vrot.slane %v1376_v33, 4  ;;  %v1379_v28 = vrot.slane %v3350_v61, 5  ;;  %v3366_v31 = vld [vmem:[%s3046_s26 + $0x6c] sm:$0xf]  ;;  %v2898_v12 = vld [vmem:[%s3696_s1 + $0x30] sm:$0xff]   ;;  %s3609_s26 = scalar_lea.vmem %s3700_s5, %s2233_s19 }
  0x49   : > { %v896_v5 = vsel %vm3165_vm6, %v894_v14, %v895_v59  ;;  %v843_v32 = vrot.slane %v3053_v7, 5  ;;  %v3370_v8 = vcombine.low %v3063_v13, %v3067_v15  ;;  %v1656_v6 = vshrl.u32 %v3366_v31, 16 }
  0x4a   : > { %v3372_v35 = vcombine.low %v893_v18, %v896_v5  ;;  %v1659_v44 = vshll.u32 %v3366_v31, 16  ;;  %v3381_v45 = vcombine.low %v3078_v29, %v3087_v34  ;;  %v1669_v13 = vshrl.u32 %v3375_v38, 16 }
  0x4b   : > { %v3385_v7 = vsel %vm3165_vm6, %v2274_v24, %v843_v32  ;;  %v845_v9 = vrot.slane %v843_v32, 4  ;;  %v1377_v15 = vsel %vm3165_vm6, %v2334_v22, %v1376_v33  ;;  %v1380_v29 = vsel %vm3165_vm6, %v1378_v27, %v1379_v28 }
  0x4c   : > { %v1658_v40 = vrot.slane %v1656_v6, 4  ;;  %v1661_v47 = vrot.slane %v1659_v44, 5  ;;  %v1665_v52 = vshll.u32 %v3375_v38, 16  ;;  %v1671_v59 = vrot.slane %v1669_v13, 4  ;;  %v2899_v13 = vld [vmem:[%s3696_s1 + $0x78] sm:$0xff]  }
  0x4d   : > { %v847_v34 = vsel %vm3165_vm6, %v845_v9, %v846_v19  ;;  %v3409_v11 = vcombine.low %v1377_v15, %v1380_v29  ;;  %v1675_v14 = vshll.u32 %v294_v62, 16  ;;  %v2380_v33 = vrot.slane %v3366_v31, 9 }
  0x4e   : > { %2636 = vmatmul.mubr.msk.bf16.gmra.mrb[8].mxu0 %vm535_vm3, %v3361_v26  ;;  %v2286_v46 = vcombine.low %v3385_v7, %v847_v34  ;;  %v1662_v51 = vor.u32 %v1661_v47, %v1658_v40  ;;  %v1667_v19 = vrot.slane %v1665_v52, 5  ;;  %v1821_v5 = vrot.slane %v294_v62, 5  ;;  %v2904_v34 = vld [vmem:[%s3696_s1 + $0x88] sm:$0xff]  }
  0x4f   : > { %2548 = vmatmul.mubr.msk.bf16.vlgmr.msra.gmra.mrb[0].mxu1 %vm535_vm3, %v3370_v8  ;;  %2639 = vmatprep.mubr.msk.bf16.mxu0 %vm535_vm3, %v3372_v35  ;;  %v3418_v22 = vcombine.low %v3101_v48, %v3106_v57  ;;  %v3422_v24 = vcombine.low %v3120_v10, %v3130_v23  ;;  %v1677_v27 = vrot.slane %v1675_v14, 5  ;;  %v3450_v58 = vcombine.low %v3143_v36, %v3148_v43  ;;  %v2903_v36 = vld [vmem:[%s3696_s1 + $0x80] sm:$0xff]  }
  0x50   : > { %2564 = vmatpush3.bf16.msra.mxu1 %v3153_v4  ;;  %2551 = vmatprep.mubr.msk.bf16.mxu1 %vm535_vm3, %v3381_v45  ;;  %v1663_v18 = vrot.slane %v1662_v51, 4  ;;  %v1818_v4 = vrot.slane %v3375_v38, 5  ;;  %v1672_v32 = vor.u32 %v1671_v59, %v1667_v19  ;;  %v3454_v9 = vcombine.low %v3192_v20, %v3200_v25  ;;  %v2902_v25 = vld [vmem:[%s3696_s1 + $0x38] sm:$0xff]  }
  0x51   : > { %2565 = vmatprep.subr.bf16.mxu1 %v2893_v16  ;;  %v3473_v43 = vcombine.low %v3244_v0, %v3253_v41  ;;  %v2308_v20 = vcombine.low %v3339_v63, %v3328_v53  ;;  %v2354_v0 = vcombine.low %v3366_v31, %v3375_v38  ;;  %v1217_v41 = vshll.u32 %v3339_v63, 16 }
  0x52   : > { %v1668_v28 = vsel %vm3082_vm2, %v1663_v18, %v1667_v19  ;;  %v3428_v6 = vsel %vm3165_vm6, %v2380_v33, %v1818_v4  ;;  %v1820_v44 = vrot.slane %v1818_v4, 4  ;;  %v1673_v48 = vrot.slane %v1672_v32, 4 }
  0x53   : > { %v1227_v31 = vshrl.u32 %v3328_v53, 16  ;;  %v1219_v15 = vrot.slane %v1217_v41, 5 }
  0x54   : > { %2566 = vmatpush3.bf16.msra.mxu1 %v2893_v16  ;;  %v3434_v57 = vsel %vm3165_vm6, %v1820_v44, %v1821_v5  ;;  %v1678_v23 = vsel %vm3082_vm2, %v1673_v48, %v1677_v27 }
  0x55   : > { %2583 = vmatprep.subr.bf16.mxu1 %v2898_v12  ;;  %v2385_v10 = vcombine.low %v3428_v6, %v3434_v57  ;;  %v3446_v7 = vcombine.low %v1668_v28, %v1678_v23  ;;  %v1229_v29 = vrot.slane %v1227_v31, 4 }
  0x56   : > { %2640 = vmatmul.mubr.msk.bf16.gmra.mrb[12].mxu0 %vm535_vm3, %v3409_v11 }
  0x57   : > { %2552 = vmatmul.mubr.msk.bf16.gmra.mrb[4].mxu1 %vm535_vm3, %v3418_v22  ;;  %2647 = vmatprep.mubr.msk.bf16.mxu0 %vm535_vm3, %v3381_v45 }
  0x58   : > { %2555 = vmatprep.mubr.msk.bf16.mxu1 %vm535_vm3, %v3422_v24 }
  0x5e   : > { %2648 = vmatmul.mubr.msk.bf16.vlgmr.msra.gmra.mrb[0].mxu0 %vm535_vm3, %v3418_v22 }
  0x5f   : > { %2556 = vmatmul.mubr.msk.bf16.gmra.mrb[8].mxu1 %vm535_vm3, %v3450_v58  ;;  %2664 = vmatpush3.bf16.msra.mxu0 %v3300_v17  ;;  %v1223_v17 = vshll.u32 %v3328_v53, 16 }
  0x60   : > { %2559 = vmatprep.mubr.msk.bf16.mxu1 %vm535_vm3, %v3454_v9  ;;  %2651 = vmatprep.mubr.msk.bf16.mxu0 %vm535_vm3, %v3422_v24 }
  0x61   : > { %2665 = vmatprep.subr.bf16.mxu0 %v2899_v13  ;;  %v1225_v16 = vrot.slane %v1223_v17, 5 }
  0x63   : > { %2666 = vmatpush3.bf16.msra.mxu0 %v2899_v13  ;;  %v1230_v53 = vor.u32 %v1229_v29, %v1225_v16 }
  0x64   : > { %2683 = vmatprep.subr.bf16.mxu0 %v2903_v36 }
  0x65   : > { %v1231_v40 = vrot.slane %v1230_v53, 4 }
  0x66   : > { %2652 = vmatmul.mubr.msk.bf16.gmra.mrb[4].mxu0 %vm535_vm3, %v3450_v58 }
  0x67   : > { %2560 = vmatmul.mubr.msk.bf16.gmra.mrb[12].mxu1 %vm535_vm3, %v3473_v43  ;;  %2655 = vmatprep.mubr.msk.bf16.mxu0 %vm535_vm3, %v3454_v9 }
  0x68   : > { %2567 = vmatprep.mubr.msk.bf16.mxu1 %vm535_vm3, %v2286_v46 }
  0x6e   : > { %2656 = vmatmul.mubr.msk.bf16.gmra.mrb[8].mxu0 %vm535_vm3, %v3473_v43 }
  0x6f   : > { %2568 = vmatmul.mubr.msk.bf16.vlgmr.msra.gmra.mrb[0].mxu1 %vm535_vm3, %v3218_v42  ;;  %2659 = vmatprep.mubr.msk.bf16.mxu0 %vm535_vm3, %v2308_v20  ;;  %v1214_v42 = vshrl.u32 %v3339_v63, 16  ;;  %v1233_v63 = vshll.u32 %v3350_v61, 16 }
  0x70   : > { %2584 = vmatpush3.bf16.msra.mxu1 %v2898_v12  ;;  %2571 = vmatprep.mubr.msk.bf16.mxu1 %vm535_vm3, %v3250_v2 }
  0x71   : > { %2585 = vmatprep.subr.bf16.mxu1 %v2902_v25  ;;  %v1216_v38 = vrot.slane %v1214_v42, 4  ;;  %v1235_v47 = vrot.slane %v1233_v63, 5 }
  0x74   : > { %2586 = vmatpush3.bf16.msra.mxu1 %v2902_v25 }
  0x75   : > { %2703 = vmatprep.subr.bf16.mxu1 %v3013_v1 }
  0x76   : > { %2660 = vmatmul.mubr.msk.bf16.gmra.mrb[12].mxu0 %vm535_vm3, %v2354_v0 }
  0x77   : > { %2572 = vmatmul.mubr.msk.bf16.gmra.mrb[4].mxu1 %vm535_vm3, %v3286_v56  ;;  %2667 = vmatprep.mubr.msk.bf16.mxu0 %vm535_vm3, %v3158_v49  ;;  %v1220_v49 = vor.u32 %v1219_v15, %v1216_v38 }
  0x78   : > { %2575 = vmatprep.mubr.msk.bf16.mxu1 %vm535_vm3, %v3322_v50 }
  0x79   : > { %v1221_v62 = vrot.slane %v1220_v49, 4 }
  0x7e   : > { %2668 = vmatmul.mubr.msk.bf16.vlgmr.msra.gmra.mrb[0].mxu0 %vm535_vm3, %v3195_v21  ;;  %v1226_v21 = vsel %vm3082_vm2, %v1221_v62, %v1225_v16 }
  0x7f   : > { %2576 = vmatmul.mubr.msk.bf16.gmra.mrb[8].mxu1 %vm535_vm3, %v3332_v55  ;;  %2684 = vmatpush3.bf16.msra.mxu0 %v2903_v36 }
  0x80   : > { %2579 = vmatprep.mubr.msk.bf16.mxu1 %vm535_vm3, %v3361_v26  ;;  %2671 = vmatprep.mubr.msk.bf16.mxu0 %vm535_vm3, %v3216_v39  ;;  %v1236_v39 = vsel %vm3082_vm2, %v1231_v40, %v1235_v47 }
  0x81   : > { %2685 = vmatprep.subr.bf16.mxu0 %v2904_v34  ;;  %v2323_v61 = vcombine.low %v1226_v21, %v1236_v39 }
  0x83   : > { %2686 = vmatpush3.bf16.msra.mxu0 %v2904_v34 }
  0x86   : > { %2672 = vmatmul.mubr.msk.bf16.gmra.mrb[4].mxu0 %vm535_vm3, %v3266_v37 }
  0x87   : > { %2580 = vmatmul.mubr.msk.bf16.gmra.mrb[12].mxu1 %vm535_vm3, %v3372_v35  ;;  %2675 = vmatprep.mubr.msk.bf16.mxu0 %vm535_vm3, %v3289_v60 }
  0x88   : > { %2587 = vmatprep.mubr.msk.bf16.mxu1 %vm535_vm3, %v3370_v8 }
  0x8e   : > { %2676 = vmatmul.mubr.msk.bf16.gmra.mrb[8].mxu0 %vm535_vm3, %v3330_v54 }
  0x8f   : > { %2588 = vmatmul.mubr.msk.bf16.vlgmr.msra.gmra.mrb[0].mxu1 %vm535_vm3, %v3381_v45  ;;  %2679 = vmatprep.mubr.msk.bf16.mxu0 %vm535_vm3, %v2323_v61 }
  0x90   : > { %2705 = vmatpush3.bf16.msra.mxu1 %v3013_v1  ;;  %2591 = vmatprep.mubr.msk.bf16.mxu1 %vm535_vm3, %v3418_v22 }
  0x91   : > { %2704 = vmatprep.subr.bf16.mxu1 %v3025_v3 }
  0x94   : > { %2706 = vmatpush3.bf16.msra.mxu1 %v3025_v3 }
  0x96   : > { %2680 = vmatmul.mubr.msk.bf16.gmra.mrb[12].mxu0 %vm535_vm3, %v3446_v7 }
  0x97   : > { %2592 = vmatmul.mubr.msk.bf16.gmra.mrb[4].mxu1 %vm535_vm3, %v3422_v24  ;;  %2687 = vmatprep.mubr.msk.bf16.mxu0 %vm535_vm3, %v3250_v2 }
  0x98   : > { %2595 = vmatprep.mubr.msk.bf16.mxu1 %vm535_vm3, %v3450_v58 }
  0x9e   : > { %2688 = vmatmul.mubr.msk.bf16.vlgmr.msra.gmra.mrb[0].mxu0 %vm535_vm3, %v3286_v56 }
  0x9f   : > { %2596 = vmatmul.mubr.msk.bf16.gmra.mrb[8].mxu1 %vm535_vm3, %v3454_v9  ;;  %2691 = vmatprep.mubr.msk.bf16.mxu0 %vm535_vm3, %v3322_v50 }
  0xa0   : > { %2599 = vmatprep.mubr.msk.bf16.mxu1 %vm535_vm3, %v3473_v43 }
  0xa6   : > { %2692 = vmatmul.mubr.msk.bf16.gmra.mrb[4].mxu0 %vm535_vm3, %v3332_v55  ;;  %v3582_v55 = vld [vmem:[%s3697_s2] ss:$0 sm:$0xff] }
  0xa7   : > { %2600 = vmatmul.mubr.msk.bf16.gmra.mrb[12].mxu1 %vm535_vm3, %v2308_v20  ;;  %2695 = vmatprep.mubr.msk.bf16.mxu0 %vm535_vm3, %v3361_v26 }
  0xa8   : > { %2615 = vmatprep.mubr.msk.bf16.mxu1 %vm535_vm3, %v3266_v37 }
  0xae   : > { %2696 = vmatmul.mubr.msk.bf16.gmra.mrb[8].mxu0 %vm535_vm3, %v3372_v35  ;;  %v3588_v35 = vld [vmem:[%s3698_s3] ss:$0 sm:$0xff] }
  0xaf   : > { %2616 = vmatmul.mubr.msk.bf16.vlgmr.msra.gmra.mrb[8].mxu1 %vm535_vm3, %v3289_v60  ;;  %2699 = vmatprep.mubr.msk.bf16.mxu0 %vm535_vm3, %v3409_v11  ;;  %v3594_v11 = vld [vmem:[%s3699_s4] ss:$0 sm:$0xff] }
  0xb0   : > { %2619 = vmatprep.mubr.msk.bf16.mxu1 %vm535_vm3, %v3330_v54 }
  0xb6   : > { %2700 = vmatmul.mubr.msk.bf16.gmra.mrb[12].mxu0 %vm535_vm3, %v2385_v10 }
  0xb7   : > { %2620 = vmatmul.mubr.msk.bf16.gmra.mrb[12].mxu1 %vm535_vm3, %v2323_v61 }
 0x162   : > { %v2589_v1 = vpop.f32.mrb[0].mxu1 }
 0x163   : > { %v1134_v3 = vpop.f32.mrb[1].mxu1 }
 0x164   : > { %v2590_v30 = vpop.f32.mrb[2].mxu1 }
 0x165   : > { %v1137_v2 = vpop.f32.mrb[3].mxu1 }
 0x16a   : > { %v2593_v37 = vpop.f32.mrb[4].mxu1 }
 0x16b   : > { %v1150_v56 = vpop.f32.mrb[5].mxu1 }
 0x16c   : > { %v2594_v60 = vpop.f32.mrb[6].mxu1 }
 0x16d   : > { %v1153_v50 = vpop.f32.mrb[7].mxu1 }
 0x171   : > { %v2689_v54 = vpop.f32.mrb[0].mxu0 }
 0x172   : > { %v2707_v26 = vadd.f32 %v2689_v54, %v2589_v1  ;;  %v1880_v8 = vpop.f32.mrb[1].mxu0 }
 0x173   : > { %v2708_v45 = vadd.f32 %v1880_v8, %v1134_v3  ;;  %v2690_v46 = vpop.f32.mrb[2].mxu0 }
 0x174   : > { %v1968_v51 = vadd.f32 %v2707_v26, %v3582_v55  ;;  %v2709_v52 = vadd.f32 %v2690_v46, %v2590_v30  ;;  %v1883_v59 = vpop.f32.mrb[3].mxu0 }
 0x175   : > { %v1966_v12 = vadd.f32 %v2708_v45, %v3582_v55  ;;  %v2710_v14 = vadd.f32 %v1883_v59, %v1137_v2 }
 0x176   : > { %v1991_v33 = vmul.f32 %v3588_v35, %v1968_v51  ;;  %v1969_v18 = vadd.f32 %v2709_v52, %v3582_v55 }
 0x177   : > { %v1989_v19 = vmul.f32 %v3588_v35, %v1966_v12  ;;  %v1967_v4 = vadd.f32 %v2710_v14, %v3582_v55 }
 0x178   : > { %v2014_v5 = vadd.f32 %v3594_v11, %v1991_v33  ;;  %v1992_v22 = vmul.f32 %v3588_v35, %v1969_v18 }
 0x179   : > { %v2012_v24 = vadd.f32 %v3594_v11, %v1989_v19  ;;  %v1990_v27 = vmul.f32 %v3588_v35, %v1967_v4  ;;  %v2693_v28 = vpop.f32.mrb[4].mxu0 }
 0x17a   : > { %v2030_v32 = vmax.f32 %v2014_v5, 0.0  ;;  %v2015_v6 = vadd.f32 %v3594_v11, %v1992_v22  ;;  %v2711_v44 = vadd.f32 %v2693_v28, %v2593_v37  ;;  %v1896_v48 = vpop.f32.mrb[5].mxu0 }
 0x17b   : > { %v2028_v57 = vmax.f32 %v2012_v24, 0.0  ;;  %v2013_v10 = vadd.f32 %v3594_v11, %v1990_v27  ;;  %v2712_v23 = vadd.f32 %v1896_v48, %v1150_v56  ;;  %v2694_v7 = vpop.f32.mrb[6].mxu0 }
 0x17c   : > { %v2419_v58 = vpack.c.bf16 %v2030_v32, %v2030_v32  ;;  %v2031_v9 = vmax.f32 %v2015_v6, 0.0  ;;  %v1972_v13 = vadd.f32 %v2711_v44, %v3582_v55  ;;  %v2713_v36 = vadd.f32 %v2694_v7, %v2594_v60  ;;  %v1899_v43 = vpop.f32.mrb[7].mxu0 }
 0x17d   : > { %v2417_v20 = vpack.c.bf16 %v2028_v57, %v2028_v57  ;;  %v2029_v25 = vmax.f32 %v2013_v10, 0.0  ;;  %v1970_v0 = vadd.f32 %v2712_v23, %v3582_v55  ;;  %v2714_v42 = vadd.f32 %v1899_v43, %v1153_v50 }
 0x17e   : > { %2111 = vst.msk [vmem:[%s3609_s26 + $0x8] sm:$0xf] %vm2108_vm7, %v2419_v58  ;;  %v2420_v41 = vpack.c.bf16 %v2031_v9, %v2031_v9  ;;  %v1995_v17 = vmul.f32 %v3588_v35, %v1972_v13  ;;  %v1973_v31 = vadd.f32 %v2713_v36, %v3582_v55 }
 0x17f   : > { %2109 = vst.msk [vmem:[%s3609_s26] sm:$0xf] %vm2108_vm7, %v2417_v20  ;;  %v2418_v38 = vpack.c.bf16 %v2029_v25, %v2029_v25  ;;  %v1993_v15 = vmul.f32 %v3588_v35, %v1970_v0  ;;  %v1971_v16 = vadd.f32 %v2714_v42, %v3582_v55 }
 0x180   : > { %2112 = vst.msk [vmem:[%s3609_s26 + $0xc] sm:$0xf] %vm2108_vm7, %v2420_v41  ;;  %v2018_v29 = vadd.f32 %v3594_v11, %v1995_v17  ;;  %v1996_v34 = vmul.f32 %v3588_v35, %v1973_v31 }
 0x181   : > { %2110 = vst.msk [vmem:[%s3609_s26 + $0x4] sm:$0xf] %vm2108_vm7, %v2418_v38  ;;  %v2016_v49 = vadd.f32 %v3594_v11, %v1993_v15  ;;  %v1994_v53 = vmul.f32 %v3588_v35, %v1971_v16  ;;  %v2697_v63 = vpop.f32.mrb[8].mxu0 }
 0x182   : > { %v2034_v62 = vmax.f32 %v2018_v29, 0.0  ;;  %v2019_v40 = vadd.f32 %v3594_v11, %v1996_v34  ;;  %v2617_v47 = vpop.f32.mrb[8].mxu1  ;;  %v1912_v21 = vpop.f32.mrb[9].mxu0 }
 0x183   : > { %v2032_v39 = vmax.f32 %v2016_v49, 0.0  ;;  %v2017_v61 = vadd.f32 %v3594_v11, %v1994_v53  ;;  %v2715_v1 = vadd.f32 %v2697_v63, %v2617_v47  ;;  %v1326_v3 = vpop.f32.mrb[9].mxu1  ;;  %v2698_v30 = vpop.f32.mrb[10].mxu0 }
 0x184   : > { %v2423_v2 = vpack.c.bf16 %v2034_v62, %v2034_v62  ;;  %v2035_v37 = vmax.f32 %v2019_v40, 0.0  ;;  %v2716_v56 = vadd.f32 %v1912_v21, %v1326_v3  ;;  %v2618_v60 = vpop.f32.mrb[10].mxu1  ;;  %v1915_v50 = vpop.f32.mrb[11].mxu0 }
 0x185   : > { %v2421_v54 = vpack.c.bf16 %v2032_v39, %v2032_v39  ;;  %v2033_v26 = vmax.f32 %v2017_v61, 0.0  ;;  %v1976_v8 = vadd.f32 %v2715_v1, %v3582_v55  ;;  %v2717_v45 = vadd.f32 %v2698_v30, %v2618_v60  ;;  %v1329_v46 = vpop.f32.mrb[11].mxu1 }
 0x186   : > { %2115 = vst.msk [vmem:[%s3609_s26 + $0x18] sm:$0xf] %vm2108_vm7, %v2423_v2  ;;  %v2424_v51 = vpack.c.bf16 %v2035_v37, %v2035_v37  ;;  %v1974_v52 = vadd.f32 %v2716_v56, %v3582_v55  ;;  %v2718_v59 = vadd.f32 %v1915_v50, %v1329_v46 }
 0x187   : > { %2113 = vst.msk [vmem:[%s3609_s26 + $0x10] sm:$0xf] %vm2108_vm7, %v2421_v54  ;;  %v2422_v12 = vpack.c.bf16 %v2033_v26, %v2033_v26  ;;  %v1999_v14 = vmul.f32 %v3588_v35, %v1976_v8  ;;  %v1977_v33 = vadd.f32 %v2717_v45, %v3582_v55 }
 0x188   : > { %2116 = vst.msk [vmem:[%s3609_s26 + $0x1c] sm:$0xf] %vm2108_vm7, %v2424_v51  ;;  %v1997_v18 = vmul.f32 %v3588_v35, %v1974_v52  ;;  %v1975_v19 = vadd.f32 %v2718_v59, %v3582_v55 }
 0x189   : > { %2114 = vst.msk [vmem:[%s3609_s26 + $0x14] sm:$0xf] %vm2108_vm7, %v2422_v12  ;;  %v2022_v4 = vadd.f32 %v3594_v11, %v1999_v14  ;;  %v2000_v5 = vmul.f32 %v3588_v35, %v1977_v33  ;;  %v2701_v22 = vpop.f32.mrb[12].mxu0 }
 0x18a   : > { %v2020_v24 = vadd.f32 %v3594_v11, %v1997_v18  ;;  %v1998_v27 = vmul.f32 %v3588_v35, %v1975_v19  ;;  %v2621_v28 = vpop.f32.mrb[12].mxu1  ;;  %v1928_v32 = vpop.f32.mrb[13].mxu0 }
 0x18b   : > { %v2038_v6 = vmax.f32 %v2022_v4, 0.0  ;;  %v2023_v44 = vadd.f32 %v3594_v11, %v2000_v5  ;;  %v2719_v48 = vadd.f32 %v2701_v22, %v2621_v28  ;;  %v1342_v57 = vpop.f32.mrb[13].mxu1  ;;  %v2702_v10 = vpop.f32.mrb[14].mxu0 }
 0x18c   : > { %v2036_v23 = vmax.f32 %v2020_v24, 0.0  ;;  %v2021_v7 = vadd.f32 %v3594_v11, %v1998_v27  ;;  %v2720_v58 = vadd.f32 %v1928_v32, %v1342_v57  ;;  %v2622_v9 = vpop.f32.mrb[14].mxu1  ;;  %v1931_v13 = vpop.f32.mrb[15].mxu0 }
 0x18d   : > { %v2427_v36 = vpack.c.bf16 %v2038_v6, %v2038_v6  ;;  %v2039_v43 = vmax.f32 %v2023_v44, 0.0  ;;  %v1980_v20 = vadd.f32 %v2719_v48, %v3582_v55  ;;  %v2721_v25 = vadd.f32 %v2702_v10, %v2622_v9  ;;  %v1345_v0 = vpop.f32.mrb[15].mxu1 }
 0x18e   : > { %v2425_v42 = vpack.c.bf16 %v2036_v23, %v2036_v23  ;;  %v2037_v41 = vmax.f32 %v2021_v7, 0.0  ;;  %v1978_v17 = vadd.f32 %v2720_v58, %v3582_v55  ;;  %v2722_v31 = vadd.f32 %v1931_v13, %v1345_v0 }
 0x18f   : > { %2119 = vst.msk [vmem:[%s3609_s26 + $0x28] sm:$0xf] %vm2108_vm7, %v2427_v36  ;;  %v2428_v38 = vpack.c.bf16 %v2039_v43, %v2039_v43  ;;  %v2003_v15 = vmul.f32 %v3588_v35, %v1980_v20  ;;  %v1981_v16 = vadd.f32 %v2721_v25, %v3582_v55 }
 0x190   : > { %2117 = vst.msk [vmem:[%s3609_s26 + $0x20] sm:$0xf] %vm2108_vm7, %v2425_v42  ;;  %v2426_v29 = vpack.c.bf16 %v2037_v41, %v2037_v41  ;;  %v2001_v34 = vmul.f32 %v3588_v35, %v1978_v17  ;;  %v1979_v49 = vadd.f32 %v2722_v31, %v3582_v55 }
 0x191   : > { %2120 = vst.msk [vmem:[%s3609_s26 + $0x2c] sm:$0xf] %vm2108_vm7, %v2428_v38  ;;  %v2026_v53 = vadd.f32 %v3594_v11, %v2003_v15  ;;  %v2004_v63 = vmul.f32 %v3588_v35, %v1981_v16 }
 0x192   : > { %2118 = vst.msk [vmem:[%s3609_s26 + $0x24] sm:$0xf] %vm2108_vm7, %v2426_v29  ;;  %v2024_v62 = vadd.f32 %v3594_v11, %v2001_v34  ;;  %v2002_v40 = vmul.f32 %v3588_v35, %v1979_v49 }
 0x193   : > { %v2042_v47 = vmax.f32 %v2026_v53, 0.0  ;;  %v2027_v21 = vadd.f32 %v3594_v11, %v2004_v63 }
 0x194   : > { %v2040_v39 = vmax.f32 %v2024_v62, 0.0  ;;  %v2025_v55 = vadd.f32 %v3594_v11, %v2002_v40 }
 0x195   : > { %v2431_v61 = vpack.c.bf16 %v2042_v47, %v2042_v47  ;;  %v2043_v1 = vmax.f32 %v2027_v21, 0.0 }
 0x196   : > { %v2429_v3 = vpack.c.bf16 %v2040_v39, %v2040_v39  ;;  %v2041_v30 = vmax.f32 %v2025_v55, 0.0 }
 0x197   : > { %2123 = vst.msk [vmem:[%s3609_s26 + $0x38] sm:$0xf] %vm2108_vm7, %v2431_v61  ;;  %v2432_v2 = vpack.c.bf16 %v2043_v1, %v2043_v1 }
 0x198   : > { %2121 = vst.msk [vmem:[%s3609_s26 + $0x30] sm:$0xf] %vm2108_vm7, %v2429_v3  ;;  %v2430_v37 = vpack.c.bf16 %v2041_v30, %v2041_v30 }
 0x199   : > { %2124 = vst.msk [vmem:[%s3609_s26 + $0x3c] sm:$0xf] %vm2108_vm7, %v2432_v2 }
 0x19a   : > { %2122 = vst.msk [vmem:[%s3609_s26 + $0x34] sm:$0xf] %vm2108_vm7, %v2430_v37 }
 0x19b PF: > { %s15_s22 = sadd.s32 1, %s2943_s22   ;;  %s3705_s18 = smov %s2935_s20 }
 0x19c   : > { %p12_p8 = scmp.ge.s32.totalorder %s15_s22, 6   ;;  %s3706_s19 = smov %s2939_s21 }
 0x19d   : > { %s3707_s20 = smov %s3710_s23  ;;  %s3708_s21 = smov %s3714_s24 }
 0x19e   :  { %14 = sbr.rel (!%p12_p8) target bundleno = 3 (0x3), region = 78 }

</bundles_post_ra>
